<compile_context>
chip_gen: v5e
topology: v5e:2x2
jax: 0.10.0
libtpu: 0.0.40
codegen_flags: <defaults>
</compile_context>

<pallas_src>
import functools
import math

import jax
import jax.numpy as jnp
from jax.experimental import pallas as pl
from jax.experimental.pallas import tpu as pltpu

LN_EPS = 1e-5                      # torch.nn.LayerNorm default
VMEM_LIMIT = 48 * 1024 * 1024      # keep per-step footprint portable to v7x


def _pick_tile(dim, candidates):
    for c in candidates:
        if c <= dim and dim % c == 0:
            return c
    return dim                     # fall back to full extent (always legal)


def _compiler_params(*sem):
    return pltpu.CompilerParams(
        dimension_semantics=sem, vmem_limit_bytes=VMEM_LIMIT)


def _gelu(x):
    # TODO(synk): torch.nn.GELU default is the exact erf form; erf has no
    # guaranteed Mosaic lowering, so the tanh approximation is used in-kernel.
    c = math.sqrt(2.0 / math.pi)
    return 0.5 * x * (1.0 + jnp.tanh(c * (x + 0.044715 * x * x * x)))


# ----------------------------- linear kernel --------------------------------
def _linear_kernel(x_ref, w_ref, b_ref, o_ref, *, activation):
    y = jnp.dot(x_ref[...], w_ref[...], preferred_element_type=jnp.float32)
    y = y + b_ref[...].astype(jnp.float32)
    if activation == "gelu":
        y = _gelu(y)
    o_ref[...] = y.astype(o_ref.dtype)


def linear(x, w, b, activation=None, out_dtype=jnp.bfloat16):
    """y = act(x @ w + b); x:(M,K) bf16, w:(K,N) bf16, b:(N,) f32. M/N tiled."""
    M, K = x.shape
    N = w.shape[1]
    bm = _pick_tile(M, (256, 128, 64, 32, 16, 8))

    # Large N that is not lane-tileable (e.g. vocab=30522): zero-pad so we can
    # tile N instead of pulling the whole weight into VMEM; slice logits back.
    Np = N
    if N > 512 and N % 128 != 0:
        Np = ((N + 127) // 128) * 128
        w = jnp.pad(w, ((0, 0), (0, Np - N)))
        b = jnp.pad(b, (0, Np - N))
    bn = _pick_tile(Np, (512, 256, 128))
    grid = (M // bm, Np // bn)

    out = pl.pallas_call(
        functools.partial(_linear_kernel, activation=activation),
        out_shape=jax.ShapeDtypeStruct((M, Np), out_dtype),
        grid=grid,
        in_specs=[
            pl.BlockSpec((bm, K), lambda i, j: (i, 0)),
            pl.BlockSpec((K, bn), lambda i, j: (0, j)),
            pl.BlockSpec((1, bn), lambda i, j: (0, j)),
        ],
        out_specs=pl.BlockSpec((bm, bn), lambda i, j: (i, j)),
        compiler_params=_compiler_params("parallel", "parallel"),
    )(x, w, b.reshape(1, Np))
    return out if Np == N else out[:, :N]


# ------------------- linear + (residual) + LayerNorm fusion ------------------
def _ln_epilogue(y, g_ref, beta_ref, o_ref):
    mu = jnp.mean(y, axis=-1, keepdims=True)
    var = jnp.mean(jnp.square(y - mu), axis=-1, keepdims=True)
    inv = jax.lax.rsqrt(var + LN_EPS)
    o_ref[...] = ((y - mu) * inv * g_ref[...] + beta_ref[...]).astype(o_ref.dtype)


def _linear_ln_kernel(x_ref, w_ref, b_ref, g_ref, beta_ref, o_ref, *, activation):
    y = jnp.dot(x_ref[...], w_ref[...], preferred_element_type=jnp.float32)
    y = y + b_ref[...].astype(jnp.float32)
    if activation == "gelu":
        y = _gelu(y)
    _ln_epilogue(y, g_ref, beta_ref, o_ref)


def _linear_add_ln_kernel(x_ref, w_ref, b_ref, r_ref, g_ref, beta_ref, o_ref):
    y = jnp.dot(x_ref[...], w_ref[...], preferred_element_type=jnp.float32)
    y = y + b_ref[...].astype(jnp.float32) + r_ref[...].astype(jnp.float32)
    _ln_epilogue(y, g_ref, beta_ref, o_ref)


def linear_ln(x, w, b, gamma, beta, residual=None, activation=None,
              out_dtype=jnp.bfloat16):
    """LN(act(x @ w + b) [+ residual]) — LN needs the full N axis, so only M is
    tiled; N here is always the hidden size (<= 1024) so the weight fits VMEM
    (constant index_map -> fetched once, not re-DMA'd per row tile)."""
    M, K = x.shape
    N = w.shape[1]
    bm = _pick_tile(M, (256, 128, 64, 32, 16, 8))
    row = pl.BlockSpec((bm, N), lambda i: (i, 0))
    vec = pl.BlockSpec((1, N), lambda i: (0, 0))
    in_specs = [
        pl.BlockSpec((bm, K), lambda i: (i, 0)),
        pl.BlockSpec((K, N), lambda i: (0, 0)),
        vec,
    ]
    args = [x, w, b.reshape(1, N)]
    if residual is not None:
        kernel = _linear_add_ln_kernel
        in_specs.append(row)
        args.append(residual)
    else:
        kernel = functools.partial(_linear_ln_kernel, activation=activation)
    in_specs += [vec, vec]
    args += [gamma.reshape(1, N), beta.reshape(1, N)]
    return pl.pallas_call(
        kernel,
        out_shape=jax.ShapeDtypeStruct((M, N), out_dtype),
        grid=(M // bm,),
        in_specs=in_specs,
        out_specs=row,
        compiler_params=_compiler_params("parallel"),
    )(*args)


# --------------------------- standalone layernorm ----------------------------
def _ln_kernel(x_ref, g_ref, b_ref, o_ref):
    _ln_epilogue(x_ref[...].astype(jnp.float32), g_ref, b_ref, o_ref)


def layernorm(x, gamma, beta, out_dtype=jnp.bfloat16):
    M, H = x.shape
    bm = _pick_tile(M, (256, 128, 64, 32, 16, 8))
    row = pl.BlockSpec((bm, H), lambda i: (i, 0))
    vec = pl.BlockSpec((1, H), lambda i: (0, 0))
    return pl.pallas_call(
        _ln_kernel,
        out_shape=jax.ShapeDtypeStruct((M, H), out_dtype),
        grid=(M // bm,),
        in_specs=[row, vec, vec],
        out_specs=row,
        compiler_params=_compiler_params("parallel"),
    )(x, gamma.reshape(1, H), beta.reshape(1, H))


# ---------------------------- attention kernel -------------------------------
def _attention_kernel(qkv_ref, o_ref, *, num_heads, head_dim):
    # qkv_ref: (1, S, 3H); 1/sqrt(head_dim) is pre-folded into Wq/bq.
    # Heads are sliced in-kernel from the fused QKV slab -> no HBM transposes.
    H = num_heads * head_dim
    outs = []
    for h in range(num_heads):
        q = qkv_ref[0, :, h * head_dim:(h + 1) * head_dim]
        k = qkv_ref[0, :, H + h * head_dim:H + (h + 1) * head_dim]
        v = qkv_ref[0, :, 2 * H + h * head_dim:2 * H + (h + 1) * head_dim]
        s = jax.lax.dot_general(
            q, k, (((1,), (1,)), ((), ())), preferred_element_type=jnp.float32)
        s = s - jnp.max(s, axis=-1, keepdims=True)
        p = jnp.exp(s)
        p = p * pl.reciprocal(jnp.sum(p, axis=-1, keepdims=True), approx=True)
        outs.append(jnp.dot(p.astype(v.dtype), v,
                            preferred_element_type=jnp.float32))
    # Single lane-dense store of the full (S, H) tile.
    o_ref[0] = jnp.concatenate(outs, axis=-1).astype(o_ref.dtype)


def attention(qkv, num_heads, head_dim):
    """qkv: (B, S, 3H) with q|k|v concatenated on the last axis -> (B, S, H)."""
    # TODO(synk): for long sequences (S >= 2048) switch to a flash-style
    # (tq, tk) tiled kernel to keep the O(S^2) scores out of VMEM.
    B, S, H3 = qkv.shape
    H = num_heads * head_dim
    return pl.pallas_call(
        functools.partial(_attention_kernel,
                          num_heads=num_heads, head_dim=head_dim),
        out_shape=jax.ShapeDtypeStruct((B, S, H), jnp.bfloat16),
        grid=(B,),
        in_specs=[pl.BlockSpec((1, S, H3), lambda b: (b, 0, 0))],
        out_specs=pl.BlockSpec((1, S, H), lambda b: (b, 0, 0)),
        compiler_params=_compiler_params("parallel"),
    )(qkv)


# ------------------------------ parameters -----------------------------------
def init_params(key, vocab_size, max_seq_len, hidden, ffn, num_layers, num_heads):
    head_dim = hidden // num_heads
    qscale = 1.0 / math.sqrt(head_dim)
    n_keys = 2 + num_layers * 6 + 4
    it = iter(list(jax.random.split(key, n_keys)))

    def dense(fan_in, fan_out, dtype=jnp.bfloat16):
        w = 0.02 * jax.random.normal(next(it), (fan_in, fan_out), jnp.float32)
        return (w.astype(dtype), jnp.zeros((fan_out,), jnp.float32))

    def ln():
        return (jnp.ones((hidden,), jnp.float32), jnp.zeros((hidden,), jnp.float32))

    params = {
        "tok_emb": 0.02 * jax.random.normal(next(it), (vocab_size, hidden), jnp.float32),
        "pos_emb": 0.02 * jax.random.normal(next(it), (max_seq_len, hidden), jnp.float32),
        "emb_ln": ln(),
        "layers": [],
    }
    for _ in range(num_layers):
        wq, bq = dense(hidden, hidden, jnp.float32)
        wk, bk = dense(hidden, hidden, jnp.float32)
        wv, bv = dense(hidden, hidden, jnp.float32)
        # Fuse Q/K/V and fold the 1/sqrt(head_dim) attention scale into Wq/bq.
        wqkv = jnp.concatenate([wq * qscale, wk, wv], axis=1).astype(jnp.bfloat16)
        bqkv = jnp.concatenate([bq * qscale, bk, bv], axis=0)
        params["layers"].append({
            "wqkv": (wqkv, bqkv),
            "wo": dense(hidden, hidden),
            "ln1": ln(),
            "w1": dense(hidden, ffn),
            "w2": dense(ffn, hidden),
            "ln2": ln(),
        })
    # BERTPreTrainingHead: mlm_head = Linear -> GELU -> LayerNorm -> Linear(vocab)
    params["mlm_fc"] = dense(hidden, hidden)
    params["mlm_ln"] = ln()
    params["mlm_out"] = dense(hidden, vocab_size)   # independent, as in the spec
    params["nsp"] = dense(hidden, 2)
    return params


# ------------------------------- forward -------------------------------------
@functools.partial(jax.jit, static_argnames=("num_heads",))
def bert_for_pretraining(params, input_ids, attention_mask, token_type_ids, *,
                         num_heads):
    # Signature parity with the reference: attention_mask / token_type_ids are
    # accepted but unused (reference forward calls self.bert(input_ids) only).
    del attention_mask, token_type_ids
    B, S = input_ids.shape
    H = params["tok_emb"].shape[1]
    head_dim = H // num_heads

    # --- BERT encoder ---
    x = params["tok_emb"][input_ids] + params["pos_emb"][:S][None, :, :]  # glue gather
    x = layernorm(x.reshape(B * S, H), *params["emb_ln"])                 # bf16 (B*S, H)

    for lp in params["layers"]:
        qkv = linear(x, *lp["wqkv"])                                  # fused QKV (B*S, 3H)
        a = attention(qkv.reshape(B, S, 3 * H), num_heads, head_dim)  # (B, S, H)
        x = linear_ln(a.reshape(B * S, H), *lp["wo"], *lp["ln1"],
                      residual=x)                                     # LN(x + attn)
        f = linear(x, *lp["w1"], activation="gelu")
        x = linear_ln(f, *lp["w2"], *lp["ln2"], residual=x)           # LN(x + ffn)

    encoded = x.reshape(B, S, H)

    # --- BERTPreTrainingHead ---
    h = linear_ln(x, *params["mlm_fc"], *params["mlm_ln"], activation="gelu")
    mlm_logits = linear(h, *params["mlm_out"], out_dtype=jnp.float32).reshape(B, S, -1)

    cls_rep = encoded[:, 0, :]                                        # (B, H)
    nsp_logits = linear(cls_rep, *params["nsp"], out_dtype=jnp.float32)
    return mlm_logits, nsp_logits


if __name__ == "__main__":
    # Scaled-down config ('base' would be hidden=768, 12 layers, 12 heads).
    VOCAB, MAX_SEQ, HIDDEN, FFN, LAYERS, HEADS = 512, 16, 128, 512, 2, 4
    B, S = 2, 8

    key = jax.random.PRNGKey(0)
    pkey, dkey = jax.random.split(key)
    params = init_params(pkey, VOCAB, MAX_SEQ, HIDDEN, FFN, LAYERS, HEADS)

    input_ids = jax.random.randint(dkey, (B, S), 0, VOCAB, dtype=jnp.int32)
    attention_mask = jnp.ones((B, S), jnp.int32)
    token_type_ids = jnp.zeros((B, S), jnp.int32)

    mlm_logits, nsp_logits = bert_for_pretraining(
        params, input_ids, attention_mask, token_type_ids, num_heads=HEADS
    )
    jax.block_until_ready((mlm_logits, nsp_logits))

    assert mlm_logits.shape == (B, S, VOCAB), mlm_logits.shape
    assert nsp_logits.shape == (B, 2), nsp_logits.shape
    assert mlm_logits.dtype == jnp.float32 and nsp_logits.dtype == jnp.float32
    assert bool(jnp.isfinite(mlm_logits).all()) and bool(jnp.isfinite(nsp_logits).all())
    print("KERNEL_OK")
</pallas_src>

<mosaic_0001>
module attributes {stable_mosaic.version = 11 : i64} {
  func.func @_linear_add_ln_kernel(%arg0: i32, %arg1: memref<16x128xbf16, #tpu.memory_space<vmem>>, %arg2: memref<128x128xbf16, #tpu.memory_space<vmem>>, %arg3: memref<1x128xf32, #tpu.memory_space<vmem>>, %arg4: memref<16x128xbf16, #tpu.memory_space<vmem>>, %arg5: memref<1x128xf32, #tpu.memory_space<vmem>>, %arg6: memref<1x128xf32, #tpu.memory_space<vmem>>, %arg7: memref<16x128xbf16, #tpu.memory_space<vmem>>) attributes {dimension_semantics = [#tpu.dimension_semantics<parallel>], iteration_bounds = array<i64: 1>, scalar_prefetch = 0 : i64, scratch_operands = 0 : i64, tpu.core_type = #tpu.core_type<tc>, window_params = [{transform_indices = @transform_0, window_bounds = array<i64: 16, 128>}, {pipeline_mode = #tpu.pipeline_mode<synchronous>, transform_indices = @transform_1, window_bounds = array<i64: 128, 128>}, {pipeline_mode = #tpu.pipeline_mode<synchronous>, transform_indices = @transform_2, window_bounds = array<i64: 1, 128>}, {transform_indices = @transform_3, window_bounds = array<i64: 16, 128>}, {pipeline_mode = #tpu.pipeline_mode<synchronous>, transform_indices = @transform_4, window_bounds = array<i64: 1, 128>}, {pipeline_mode = #tpu.pipeline_mode<synchronous>, transform_indices = @transform_5, window_bounds = array<i64: 1, 128>}, {transform_indices = @transform_6, window_bounds = array<i64: 16, 128>}]} {
    %c0 = arith.constant 0 : index
    %c0_0 = arith.constant 0 : index
    %0 = vector.load %arg1[%c0, %c0_0] : memref<16x128xbf16, #tpu.memory_space<vmem>>, vector<16x128xbf16>
    %c0_1 = arith.constant 0 : index
    %c0_2 = arith.constant 0 : index
    %1 = vector.load %arg2[%c0_1, %c0_2] : memref<128x128xbf16, #tpu.memory_space<vmem>>, vector<128x128xbf16>
    %cst = arith.constant dense<0.000000e+00> : vector<16x128xf32>
    %2 = tpu.matmul %0, %1, %cst {dimension_numbers = #tpu.dot_dimension_numbers<[1], [0], [0], [1], [0, 0, 1, 1], [], []>} : vector<16x128xbf16>, vector<128x128xbf16>, vector<16x128xf32> -> vector<16x128xf32>
    %c0_3 = arith.constant 0 : index
    %c0_4 = arith.constant 0 : index
    %3 = vector.load %arg3[%c0_3, %c0_4] : memref<1x128xf32, #tpu.memory_space<vmem>>, vector<1x128xf32>
    %4 = vector.broadcast %3 : vector<1x128xf32> to vector<16x128xf32>
    %5 = arith.addf %2, %4 : vector<16x128xf32>
    %c0_5 = arith.constant 0 : index
    %c0_6 = arith.constant 0 : index
    %6 = vector.load %arg4[%c0_5, %c0_6] : memref<16x128xbf16, #tpu.memory_space<vmem>>, vector<16x128xbf16>
    %7 = arith.extf %6 : vector<16x128xbf16> to vector<16x128xf32>
    %8 = arith.addf %5, %7 : vector<16x128xf32>
    %cst_7 = arith.constant dense<0.000000e+00> : vector<16xf32>
    %9 = vector.multi_reduction <add>, %8, %cst_7 [1] : vector<16x128xf32> to vector<16xf32>
    %10 = vector.shape_cast %9 : vector<16xf32> to vector<16x1xf32>
    %cst_8 = arith.constant 1.280000e+02 : f32
    %11 = vector.broadcast %cst_8 : f32 to vector<16x1xf32>
    %12 = arith.divf %10, %11 : vector<16x1xf32>
    %13 = vector.broadcast %12 : vector<16x1xf32> to vector<16x128xf32>
    %14 = arith.subf %8, %13 : vector<16x128xf32>
    %15 = arith.mulf %14, %14 : vector<16x128xf32>
    %cst_9 = arith.constant dense<0.000000e+00> : vector<16xf32>
    %16 = vector.multi_reduction <add>, %15, %cst_9 [1] : vector<16x128xf32> to vector<16xf32>
    %17 = vector.shape_cast %16 : vector<16xf32> to vector<16x1xf32>
    %cst_10 = arith.constant 1.280000e+02 : f32
    %18 = vector.broadcast %cst_10 : f32 to vector<16x1xf32>
    %19 = arith.divf %17, %18 : vector<16x1xf32>
    %cst_11 = arith.constant 9.99999974E-6 : f32
    %20 = vector.broadcast %cst_11 : f32 to vector<16x1xf32>
    %21 = arith.addf %19, %20 : vector<16x1xf32>
    %22 = math.rsqrt %21 : vector<16x1xf32>
    %23 = vector.broadcast %12 : vector<16x1xf32> to vector<16x128xf32>
    %24 = arith.subf %8, %23 : vector<16x128xf32>
    %25 = vector.broadcast %22 : vector<16x1xf32> to vector<16x128xf32>
    %26 = arith.mulf %24, %25 : vector<16x128xf32>
    %c0_12 = arith.constant 0 : index
    %c0_13 = arith.constant 0 : index
    %27 = vector.load %arg5[%c0_12, %c0_13] : memref<1x128xf32, #tpu.memory_space<vmem>>, vector<1x128xf32>
    %28 = vector.broadcast %27 : vector<1x128xf32> to vector<16x128xf32>
    %29 = arith.mulf %26, %28 : vector<16x128xf32>
    %c0_14 = arith.constant 0 : index
    %c0_15 = arith.constant 0 : index
    %30 = vector.load %arg6[%c0_14, %c0_15] : memref<1x128xf32, #tpu.memory_space<vmem>>, vector<1x128xf32>
    %31 = vector.broadcast %30 : vector<1x128xf32> to vector<16x128xf32>
    %32 = arith.addf %29, %31 : vector<16x128xf32>
    %33 = arith.truncf %32 : vector<16x128xf32> to vector<16x128xbf16>
    %c0_16 = arith.constant 0 : index
    %c0_17 = arith.constant 0 : index
    %34 = vector.load %arg7[%c0_16, %c0_17] : memref<16x128xbf16, #tpu.memory_space<vmem>>, vector<16x128xbf16>
    tpu.vector_store %arg7[%c0_16, %c0_17], %33 {strides = array<i32>} : memref<16x128xbf16, #tpu.memory_space<vmem>>, vector<16x128xbf16>,
    return
  }
  func.func @transform_0(%arg0: i32) -> (i32, i32) {
    %c0_i32 = arith.constant 0 : i32
    %c0_i32_0 = arith.constant 0 : i32
    return %arg0, %c0_i32 : i32, i32
  }
  func.func @transform_1(%arg0: i32) -> (i32, i32) {
    %c0_i32 = arith.constant 0 : i32
    %c0_i32_0 = arith.constant 0 : i32
    %c0_i32_1 = arith.constant 0 : i32
    return %c0_i32, %c0_i32_0 : i32, i32
  }
  func.func @transform_2(%arg0: i32) -> (i32, i32) {
    %c0_i32 = arith.constant 0 : i32
    %c0_i32_0 = arith.constant 0 : i32
    %c0_i32_1 = arith.constant 0 : i32
    return %c0_i32, %c0_i32_0 : i32, i32
  }
  func.func @transform_3(%arg0: i32) -> (i32, i32) {
    %c0_i32 = arith.constant 0 : i32
    %c0_i32_0 = arith.constant 0 : i32
    return %arg0, %c0_i32 : i32, i32
  }
  func.func @transform_4(%arg0: i32) -> (i32, i32) {
    %c0_i32 = arith.constant 0 : i32
    %c0_i32_0 = arith.constant 0 : i32
    %c0_i32_1 = arith.constant 0 : i32
    return %c0_i32, %c0_i32_0 : i32, i32
  }
  func.func @transform_5(%arg0: i32) -> (i32, i32) {
    %c0_i32 = arith.constant 0 : i32
    %c0_i32_0 = arith.constant 0 : i32
    %c0_i32_1 = arith.constant 0 : i32
    return %c0_i32, %c0_i32_0 : i32, i32
  }
  func.func @transform_6(%arg0: i32) -> (i32, i32) {
    %c0_i32 = arith.constant 0 : i32
    %c0_i32_0 = arith.constant 0 : i32
    return %arg0, %c0_i32 : i32, i32
  }
}

module attributes {stable_mosaic.version = 11 : i64} {
  func.func @_linear_kernel(%arg0: i32, %arg1: i32, %arg2: memref<16x128xbf16, #tpu.memory_space<vmem>>, %arg3: memref<128x128xbf16, #tpu.memory_space<vmem>>, %arg4: memref<1x128xf32, #tpu.memory_space<vmem>>, %arg5: memref<16x128xbf16, #tpu.memory_space<vmem>>) attributes {dimension_semantics = [#tpu.dimension_semantics<parallel>, #tpu.dimension_semantics<parallel>], iteration_bounds = array<i64: 1, 3>, scalar_prefetch = 0 : i64, scratch_operands = 0 : i64, tpu.core_type = #tpu.core_type<tc>, window_params = [{transform_indices = @transform_0, window_bounds = array<i64: 16, 128>}, {transform_indices = @transform_1, window_bounds = array<i64: 128, 128>}, {transform_indices = @transform_2, window_bounds = array<i64: 1, 128>}, {transform_indices = @transform_3, window_bounds = array<i64: 16, 128>}]} {
    %c0 = arith.constant 0 : index
    %c0_0 = arith.constant 0 : index
    %0 = vector.load %arg2[%c0, %c0_0] : memref<16x128xbf16, #tpu.memory_space<vmem>>, vector<16x128xbf16>
    %c0_1 = arith.constant 0 : index
    %c0_2 = arith.constant 0 : index
    %1 = vector.load %arg3[%c0_1, %c0_2] : memref<128x128xbf16, #tpu.memory_space<vmem>>, vector<128x128xbf16>
    %cst = arith.constant dense<0.000000e+00> : vector<16x128xf32>
    %2 = tpu.matmul %0, %1, %cst {dimension_numbers = #tpu.dot_dimension_numbers<[1], [0], [0], [1], [0, 0, 1, 1], [], []>} : vector<16x128xbf16>, vector<128x128xbf16>, vector<16x128xf32> -> vector<16x128xf32>
    %c0_3 = arith.constant 0 : index
    %c0_4 = arith.constant 0 : index
    %3 = vector.load %arg4[%c0_3, %c0_4] : memref<1x128xf32, #tpu.memory_space<vmem>>, vector<1x128xf32>
    %4 = vector.broadcast %3 : vector<1x128xf32> to vector<16x128xf32>
    %5 = arith.addf %2, %4 : vector<16x128xf32>
    %6 = arith.truncf %5 : vector<16x128xf32> to vector<16x128xbf16>
    %c0_5 = arith.constant 0 : index
    %c0_6 = arith.constant 0 : index
    %7 = vector.load %arg5[%c0_5, %c0_6] : memref<16x128xbf16, #tpu.memory_space<vmem>>, vector<16x128xbf16>
    tpu.vector_store %arg5[%c0_5, %c0_6], %6 {strides = array<i32>} : memref<16x128xbf16, #tpu.memory_space<vmem>>, vector<16x128xbf16>,
    return
  }
  func.func @transform_0(%arg0: i32, %arg1: i32) -> (i32, i32) {
    %c0_i32 = arith.constant 0 : i32
    %c0_i32_0 = arith.constant 0 : i32
    return %arg0, %c0_i32 : i32, i32
  }
  func.func @transform_1(%arg0: i32, %arg1: i32) -> (i32, i32) {
    %c0_i32 = arith.constant 0 : i32
    %c0_i32_0 = arith.constant 0 : i32
    return %c0_i32, %arg1 : i32, i32
  }
  func.func @transform_2(%arg0: i32, %arg1: i32) -> (i32, i32) {
    %c0_i32 = arith.constant 0 : i32
    %c0_i32_0 = arith.constant 0 : i32
    return %c0_i32, %arg1 : i32, i32
  }
  func.func @transform_3(%arg0: i32, %arg1: i32) -> (i32, i32) {
    %c0_i32 = arith.constant 0 : i32
    return %arg0, %arg1 : i32, i32
  }
}

module attributes {stable_mosaic.version = 11 : i64} {
  func.func @_ln_kernel(%arg0: i32, %arg1: memref<16x128xf32, #tpu.memory_space<vmem>>, %arg2: memref<1x128xf32, #tpu.memory_space<vmem>>, %arg3: memref<1x128xf32, #tpu.memory_space<vmem>>, %arg4: memref<16x128xbf16, #tpu.memory_space<vmem>>) attributes {dimension_semantics = [#tpu.dimension_semantics<parallel>], iteration_bounds = array<i64: 1>, scalar_prefetch = 0 : i64, scratch_operands = 0 : i64, tpu.core_type = #tpu.core_type<tc>, window_params = [{transform_indices = @transform_0, window_bounds = array<i64: 16, 128>}, {pipeline_mode = #tpu.pipeline_mode<synchronous>, transform_indices = @transform_1, window_bounds = array<i64: 1, 128>}, {pipeline_mode = #tpu.pipeline_mode<synchronous>, transform_indices = @transform_2, window_bounds = array<i64: 1, 128>}, {transform_indices = @transform_3, window_bounds = array<i64: 16, 128>}]} {
    %c0 = arith.constant 0 : index
    %c0_0 = arith.constant 0 : index
    %0 = vector.load %arg1[%c0, %c0_0] : memref<16x128xf32, #tpu.memory_space<vmem>>, vector<16x128xf32>
    %cst = arith.constant dense<0.000000e+00> : vector<16xf32>
    %1 = vector.multi_reduction <add>, %0, %cst [1] : vector<16x128xf32> to vector<16xf32>
    %2 = vector.shape_cast %1 : vector<16xf32> to vector<16x1xf32>
    %cst_1 = arith.constant 1.280000e+02 : f32
    %3 = vector.broadcast %cst_1 : f32 to vector<16x1xf32>
    %4 = arith.divf %2, %3 : vector<16x1xf32>
    %5 = vector.broadcast %4 : vector<16x1xf32> to vector<16x128xf32>
    %6 = arith.subf %0, %5 : vector<16x128xf32>
    %7 = arith.mulf %6, %6 : vector<16x128xf32>
    %cst_2 = arith.constant dense<0.000000e+00> : vector<16xf32>
    %8 = vector.multi_reduction <add>, %7, %cst_2 [1] : vector<16x128xf32> to vector<16xf32>
    %9 = vector.shape_cast %8 : vector<16xf32> to vector<16x1xf32>
    %cst_3 = arith.constant 1.280000e+02 : f32
    %10 = vector.broadcast %cst_3 : f32 to vector<16x1xf32>
    %11 = arith.divf %9, %10 : vector<16x1xf32>
    %cst_4 = arith.constant 9.99999974E-6 : f32
    %12 = vector.broadcast %cst_4 : f32 to vector<16x1xf32>
    %13 = arith.addf %11, %12 : vector<16x1xf32>
    %14 = math.rsqrt %13 : vector<16x1xf32>
    %15 = vector.broadcast %4 : vector<16x1xf32> to vector<16x128xf32>
    %16 = arith.subf %0, %15 : vector<16x128xf32>
    %17 = vector.broadcast %14 : vector<16x1xf32> to vector<16x128xf32>
    %18 = arith.mulf %16, %17 : vector<16x128xf32>
    %c0_5 = arith.constant 0 : index
    %c0_6 = arith.constant 0 : index
    %19 = vector.load %arg2[%c0_5, %c0_6] : memref<1x128xf32, #tpu.memory_space<vmem>>, vector<1x128xf32>
    %20 = vector.broadcast %19 : vector<1x128xf32> to vector<16x128xf32>
    %21 = arith.mulf %18, %20 : vector<16x128xf32>
    %c0_7 = arith.constant 0 : index
    %c0_8 = arith.constant 0 : index
    %22 = vector.load %arg3[%c0_7, %c0_8] : memref<1x128xf32, #tpu.memory_space<vmem>>, vector<1x128xf32>
    %23 = vector.broadcast %22 : vector<1x128xf32> to vector<16x128xf32>
    %24 = arith.addf %21, %23 : vector<16x128xf32>
    %25 = arith.truncf %24 : vector<16x128xf32> to vector<16x128xbf16>
    %c0_9 = arith.constant 0 : index
    %c0_10 = arith.constant 0 : index
    %26 = vector.load %arg4[%c0_9, %c0_10] : memref<16x128xbf16, #tpu.memory_space<vmem>>, vector<16x128xbf16>
    tpu.vector_store %arg4[%c0_9, %c0_10], %25 {strides = array<i32>} : memref<16x128xbf16, #tpu.memory_space<vmem>>, vector<16x128xbf16>,
    return
  }
  func.func @transform_0(%arg0: i32) -> (i32, i32) {
    %c0_i32 = arith.constant 0 : i32
    %c0_i32_0 = arith.constant 0 : i32
    return %arg0, %c0_i32 : i32, i32
  }
  func.func @transform_1(%arg0: i32) -> (i32, i32) {
    %c0_i32 = arith.constant 0 : i32
    %c0_i32_0 = arith.constant 0 : i32
    %c0_i32_1 = arith.constant 0 : i32
    return %c0_i32, %c0_i32_0 : i32, i32
  }
  func.func @transform_2(%arg0: i32) -> (i32, i32) {
    %c0_i32 = arith.constant 0 : i32
    %c0_i32_0 = arith.constant 0 : i32
    %c0_i32_1 = arith.constant 0 : i32
    return %c0_i32, %c0_i32_0 : i32, i32
  }
  func.func @transform_3(%arg0: i32) -> (i32, i32) {
    %c0_i32 = arith.constant 0 : i32
    %c0_i32_0 = arith.constant 0 : i32
    return %arg0, %c0_i32 : i32, i32
  }
}

module attributes {stable_mosaic.version = 11 : i64} {
  func.func @_attention_kernel(%arg0: i32, %arg1: memref<1x8x384xbf16, #tpu.memory_space<vmem>>, %arg2: memref<1x8x128xbf16, #tpu.memory_space<vmem>>) attributes {dimension_semantics = [#tpu.dimension_semantics<parallel>], iteration_bounds = array<i64: 2>, scalar_prefetch = 0 : i64, scratch_operands = 0 : i64, tpu.core_type = #tpu.core_type<tc>, window_params = [{transform_indices = @transform_0, window_bounds = array<i64: 1, 8, 384>}, {transform_indices = @transform_1, window_bounds = array<i64: 1, 8, 128>}]} {
    %c0 = arith.constant 0 : index
    %c0_0 = arith.constant 0 : index
    %c0_1 = arith.constant 0 : index
    %0 = vector.load %arg1[%c0, %c0_0, %c0_1] : memref<1x8x384xbf16, #tpu.memory_space<vmem>>, vector<1x8x32xbf16>
    %1 = vector.shape_cast %0 : vector<1x8x32xbf16> to vector<8x32xbf16>
    %c0_2 = arith.constant 0 : index
    %c0_3 = arith.constant 0 : index
    %c128 = arith.constant 128 : index
    %2 = vector.load %arg1[%c0_2, %c0_3, %c128] : memref<1x8x384xbf16, #tpu.memory_space<vmem>>, vector<1x8x32xbf16>
    %3 = vector.shape_cast %2 : vector<1x8x32xbf16> to vector<8x32xbf16>
    %c0_4 = arith.constant 0 : index
    %c0_5 = arith.constant 0 : index
    %c256 = arith.constant 256 : index
    %4 = vector.load %arg1[%c0_4, %c0_5, %c256] : memref<1x8x384xbf16, #tpu.memory_space<vmem>>, vector<1x8x32xbf16>
    %5 = vector.shape_cast %4 : vector<1x8x32xbf16> to vector<8x32xbf16>
    %cst = arith.constant dense<0.000000e+00> : vector<8x8xf32>
    %6 = tpu.matmul %1, %3, %cst {dimension_numbers = #tpu.dot_dimension_numbers<[1], [1], [0], [0], [0, 0, 1, 0], [], []>} : vector<8x32xbf16>, vector<8x32xbf16>, vector<8x8xf32> -> vector<8x8xf32>
    %cst_6 = arith.constant dense<0xFF800000> : vector<8xf32>
    %7 = vector.multi_reduction <maximumf>, %6, %cst_6 [1] : vector<8x8xf32> to vector<8xf32>
    %8 = vector.shape_cast %7 : vector<8xf32> to vector<8x1xf32>
    %9 = vector.broadcast %8 : vector<8x1xf32> to vector<8x8xf32>
    %10 = arith.subf %6, %9 : vector<8x8xf32>
    %11 = math.exp %10 : vector<8x8xf32>
    %cst_7 = arith.constant dense<0.000000e+00> : vector<8xf32>
    %12 = vector.multi_reduction <add>, %11, %cst_7 [1] : vector<8x8xf32> to vector<8xf32>
    %13 = vector.shape_cast %12 : vector<8xf32> to vector<8x1xf32>
    %14 = tpu.reciprocal %13 {approx = true} : vector<8x1xf32> -> vector<8x1xf32>
    %15 = vector.broadcast %14 : vector<8x1xf32> to vector<8x8xf32>
    %16 = arith.mulf %11, %15 : vector<8x8xf32>
    %17 = arith.truncf %16 : vector<8x8xf32> to vector<8x8xbf16>
    %cst_8 = arith.constant dense<0.000000e+00> : vector<8x32xf32>
    %18 = tpu.matmul %17, %5, %cst_8 {dimension_numbers = #tpu.dot_dimension_numbers<[1], [0], [0], [1], [0, 0, 1, 1], [], []>} : vector<8x8xbf16>, vector<8x32xbf16>, vector<8x32xf32> -> vector<8x32xf32>
    %c0_9 = arith.constant 0 : index
    %c0_10 = arith.constant 0 : index
    %c32 = arith.constant 32 : index
    %19 = vector.load %arg1[%c0_9, %c0_10, %c32] : memref<1x8x384xbf16, #tpu.memory_space<vmem>>, vector<1x8x32xbf16>
    %20 = vector.shape_cast %19 : vector<1x8x32xbf16> to vector<8x32xbf16>
    %c0_11 = arith.constant 0 : index
    %c0_12 = arith.constant 0 : index
    %c160 = arith.constant 160 : index
    %21 = vector.load %arg1[%c0_11, %c0_12, %c160] : memref<1x8x384xbf16, #tpu.memory_space<vmem>>, vector<1x8x32xbf16>
    %22 = vector.shape_cast %21 : vector<1x8x32xbf16> to vector<8x32xbf16>
    %c0_13 = arith.constant 0 : index
    %c0_14 = arith.constant 0 : index
    %c288 = arith.constant 288 : index
    %23 = vector.load %arg1[%c0_13, %c0_14, %c288] : memref<1x8x384xbf16, #tpu.memory_space<vmem>>, vector<1x8x32xbf16>
    %24 = vector.shape_cast %23 : vector<1x8x32xbf16> to vector<8x32xbf16>
    %cst_15 = arith.constant dense<0.000000e+00> : vector<8x8xf32>
    %25 = tpu.matmul %20, %22, %cst_15 {dimension_numbers = #tpu.dot_dimension_numbers<[1], [1], [0], [0], [0, 0, 1, 0], [], []>} : vector<8x32xbf16>, vector<8x32xbf16>, vector<8x8xf32> -> vector<8x8xf32>
    %cst_16 = arith.constant dense<0xFF800000> : vector<8xf32>
    %26 = vector.multi_reduction <maximumf>, %25, %cst_16 [1] : vector<8x8xf32> to vector<8xf32>
    %27 = vector.shape_cast %26 : vector<8xf32> to vector<8x1xf32>
    %28 = vector.broadcast %27 : vector<8x1xf32> to vector<8x8xf32>
    %29 = arith.subf %25, %28 : vector<8x8xf32>
    %30 = math.exp %29 : vector<8x8xf32>
    %cst_17 = arith.constant dense<0.000000e+00> : vector<8xf32>
    %31 = vector.multi_reduction <add>, %30, %cst_17 [1] : vector<8x8xf32> to vector<8xf32>
    %32 = vector.shape_cast %31 : vector<8xf32> to vector<8x1xf32>
    %33 = tpu.reciprocal %32 {approx = true} : vector<8x1xf32> -> vector<8x1xf32>
    %34 = vector.broadcast %33 : vector<8x1xf32> to vector<8x8xf32>
    %35 = arith.mulf %30, %34 : vector<8x8xf32>
    %36 = arith.truncf %35 : vector<8x8xf32> to vector<8x8xbf16>
    %cst_18 = arith.constant dense<0.000000e+00> : vector<8x32xf32>
    %37 = tpu.matmul %36, %24, %cst_18 {dimension_numbers = #tpu.dot_dimension_numbers<[1], [0], [0], [1], [0, 0, 1, 1], [], []>} : vector<8x8xbf16>, vector<8x32xbf16>, vector<8x32xf32> -> vector<8x32xf32>
    %c0_19 = arith.constant 0 : index
    %c0_20 = arith.constant 0 : index
    %c64 = arith.constant 64 : index
    %38 = vector.load %arg1[%c0_19, %c0_20, %c64] : memref<1x8x384xbf16, #tpu.memory_space<vmem>>, vector<1x8x32xbf16>
    %39 = vector.shape_cast %38 : vector<1x8x32xbf16> to vector<8x32xbf16>
    %c0_21 = arith.constant 0 : index
    %c0_22 = arith.constant 0 : index
    %c192 = arith.constant 192 : index
    %40 = vector.load %arg1[%c0_21, %c0_22, %c192] : memref<1x8x384xbf16, #tpu.memory_space<vmem>>, vector<1x8x32xbf16>
    %41 = vector.shape_cast %40 : vector<1x8x32xbf16> to vector<8x32xbf16>
    %c0_23 = arith.constant 0 : index
    %c0_24 = arith.constant 0 : index
    %c320 = arith.constant 320 : index
    %42 = vector.load %arg1[%c0_23, %c0_24, %c320] : memref<1x8x384xbf16, #tpu.memory_space<vmem>>, vector<1x8x32xbf16>
    %43 = vector.shape_cast %42 : vector<1x8x32xbf16> to vector<8x32xbf16>
    %cst_25 = arith.constant dense<0.000000e+00> : vector<8x8xf32>
    %44 = tpu.matmul %39, %41, %cst_25 {dimension_numbers = #tpu.dot_dimension_numbers<[1], [1], [0], [0], [0, 0, 1, 0], [], []>} : vector<8x32xbf16>, vector<8x32xbf16>, vector<8x8xf32> -> vector<8x8xf32>
    %cst_26 = arith.constant dense<0xFF800000> : vector<8xf32>
    %45 = vector.multi_reduction <maximumf>, %44, %cst_26 [1] : vector<8x8xf32> to vector<8xf32>
    %46 = vector.shape_cast %45 : vector<8xf32> to vector<8x1xf32>
    %47 = vector.broadcast %46 : vector<8x1xf32> to vector<8x8xf32>
    %48 = arith.subf %44, %47 : vector<8x8xf32>
    %49 = math.exp %48 : vector<8x8xf32>
    %cst_27 = arith.constant dense<0.000000e+00> : vector<8xf32>
    %50 = vector.multi_reduction <add>, %49, %cst_27 [1] : vector<8x8xf32> to vector<8xf32>
    %51 = vector.shape_cast %50 : vector<8xf32> to vector<8x1xf32>
    %52 = tpu.reciprocal %51 {approx = true} : vector<8x1xf32> -> vector<8x1xf32>
    %53 = vector.broadcast %52 : vector<8x1xf32> to vector<8x8xf32>
    %54 = arith.mulf %49, %53 : vector<8x8xf32>
    %55 = arith.truncf %54 : vector<8x8xf32> to vector<8x8xbf16>
    %cst_28 = arith.constant dense<0.000000e+00> : vector<8x32xf32>
    %56 = tpu.matmul %55, %43, %cst_28 {dimension_numbers = #tpu.dot_dimension_numbers<[1], [0], [0], [1], [0, 0, 1, 1], [], []>} : vector<8x8xbf16>, vector<8x32xbf16>, vector<8x32xf32> -> vector<8x32xf32>
    %c0_29 = arith.constant 0 : index
    %c0_30 = arith.constant 0 : index
    %c96 = arith.constant 96 : index
    %57 = vector.load %arg1[%c0_29, %c0_30, %c96] : memref<1x8x384xbf16, #tpu.memory_space<vmem>>, vector<1x8x32xbf16>
    %58 = vector.shape_cast %57 : vector<1x8x32xbf16> to vector<8x32xbf16>
    %c0_31 = arith.constant 0 : index
    %c0_32 = arith.constant 0 : index
    %c224 = arith.constant 224 : index
    %59 = vector.load %arg1[%c0_31, %c0_32, %c224] : memref<1x8x384xbf16, #tpu.memory_space<vmem>>, vector<1x8x32xbf16>
    %60 = vector.shape_cast %59 : vector<1x8x32xbf16> to vector<8x32xbf16>
    %c0_33 = arith.constant 0 : index
    %c0_34 = arith.constant 0 : index
    %c352 = arith.constant 352 : index
    %61 = vector.load %arg1[%c0_33, %c0_34, %c352] : memref<1x8x384xbf16, #tpu.memory_space<vmem>>, vector<1x8x32xbf16>
    %62 = vector.shape_cast %61 : vector<1x8x32xbf16> to vector<8x32xbf16>
    %cst_35 = arith.constant dense<0.000000e+00> : vector<8x8xf32>
    %63 = tpu.matmul %58, %60, %cst_35 {dimension_numbers = #tpu.dot_dimension_numbers<[1], [1], [0], [0], [0, 0, 1, 0], [], []>} : vector<8x32xbf16>, vector<8x32xbf16>, vector<8x8xf32> -> vector<8x8xf32>
    %cst_36 = arith.constant dense<0xFF800000> : vector<8xf32>
    %64 = vector.multi_reduction <maximumf>, %63, %cst_36 [1] : vector<8x8xf32> to vector<8xf32>
    %65 = vector.shape_cast %64 : vector<8xf32> to vector<8x1xf32>
    %66 = vector.broadcast %65 : vector<8x1xf32> to vector<8x8xf32>
    %67 = arith.subf %63, %66 : vector<8x8xf32>
    %68 = math.exp %67 : vector<8x8xf32>
    %cst_37 = arith.constant dense<0.000000e+00> : vector<8xf32>
    %69 = vector.multi_reduction <add>, %68, %cst_37 [1] : vector<8x8xf32> to vector<8xf32>
    %70 = vector.shape_cast %69 : vector<8xf32> to vector<8x1xf32>
    %71 = tpu.reciprocal %70 {approx = true} : vector<8x1xf32> -> vector<8x1xf32>
    %72 = vector.broadcast %71 : vector<8x1xf32> to vector<8x8xf32>
    %73 = arith.mulf %68, %72 : vector<8x8xf32>
    %74 = arith.truncf %73 : vector<8x8xf32> to vector<8x8xbf16>
    %cst_38 = arith.constant dense<0.000000e+00> : vector<8x32xf32>
    %75 = tpu.matmul %74, %62, %cst_38 {dimension_numbers = #tpu.dot_dimension_numbers<[1], [0], [0], [1], [0, 0, 1, 1], [], []>} : vector<8x8xbf16>, vector<8x32xbf16>, vector<8x32xf32> -> vector<8x32xf32>
    %76 = tpu.concatenate %18, %37, %56, %75 in 1 : vector<8x32xf32>, vector<8x32xf32>, vector<8x32xf32>, vector<8x32xf32> -> vector<8x128xf32>
    %77 = arith.truncf %76 : vector<8x128xf32> to vector<8x128xbf16>
    %c0_39 = arith.constant 0 : index
    %c0_40 = arith.constant 0 : index
    %c0_41 = arith.constant 0 : index
    %78 = vector.load %arg2[%c0_39, %c0_40, %c0_41] : memref<1x8x128xbf16, #tpu.memory_space<vmem>>, vector<1x8x128xbf16>
    %79 = vector.shape_cast %78 : vector<1x8x128xbf16> to vector<8x128xbf16>
    %80 = vector.shape_cast %77 : vector<8x128xbf16> to vector<1x8x128xbf16>
    tpu.vector_store %arg2[%c0_39, %c0_40, %c0_41], %80 {strides = array<i32>} : memref<1x8x128xbf16, #tpu.memory_space<vmem>>, vector<1x8x128xbf16>,
    return
  }
  func.func @transform_0(%arg0: i32) -> (i32, i32, i32) {
    %c0_i32 = arith.constant 0 : i32
    %c0_i32_0 = arith.constant 0 : i32
    %c0_i32_1 = arith.constant 0 : i32
    return %arg0, %c0_i32, %c0_i32_0 : i32, i32, i32
  }
  func.func @transform_1(%arg0: i32) -> (i32, i32, i32) {
    %c0_i32 = arith.constant 0 : i32
    %c0_i32_0 = arith.constant 0 : i32
    %c0_i32_1 = arith.constant 0 : i32
    return %arg0, %c0_i32, %c0_i32_0 : i32, i32, i32
  }
}

module attributes {stable_mosaic.version = 11 : i64} {
  func.func @_linear_kernel(%arg0: i32, %arg1: i32, %arg2: memref<16x128xbf16, #tpu.memory_space<vmem>>, %arg3: memref<128x512xbf16, #tpu.memory_space<vmem>>, %arg4: memref<1x512xf32, #tpu.memory_space<vmem>>, %arg5: memref<16x512xbf16, #tpu.memory_space<vmem>>) attributes {dimension_semantics = [#tpu.dimension_semantics<parallel>, #tpu.dimension_semantics<parallel>], iteration_bounds = array<i64: 1, 1>, scalar_prefetch = 0 : i64, scratch_operands = 0 : i64, tpu.core_type = #tpu.core_type<tc>, window_params = [{transform_indices = @transform_0, window_bounds = array<i64: 16, 128>}, {transform_indices = @transform_1, window_bounds = array<i64: 128, 512>}, {transform_indices = @transform_2, window_bounds = array<i64: 1, 512>}, {transform_indices = @transform_3, window_bounds = array<i64: 16, 512>}]} {
    %c0 = arith.constant 0 : index
    %c0_0 = arith.constant 0 : index
    %0 = vector.load %arg2[%c0, %c0_0] : memref<16x128xbf16, #tpu.memory_space<vmem>>, vector<16x128xbf16>
    %c0_1 = arith.constant 0 : index
    %c0_2 = arith.constant 0 : index
    %1 = vector.load %arg3[%c0_1, %c0_2] : memref<128x512xbf16, #tpu.memory_space<vmem>>, vector<128x512xbf16>
    %cst = arith.constant dense<0.000000e+00> : vector<16x512xf32>
    %2 = tpu.matmul %0, %1, %cst {dimension_numbers = #tpu.dot_dimension_numbers<[1], [0], [0], [1], [0, 0, 1, 1], [], []>} : vector<16x128xbf16>, vector<128x512xbf16>, vector<16x512xf32> -> vector<16x512xf32>
    %c0_3 = arith.constant 0 : index
    %c0_4 = arith.constant 0 : index
    %3 = vector.load %arg4[%c0_3, %c0_4] : memref<1x512xf32, #tpu.memory_space<vmem>>, vector<1x512xf32>
    %4 = vector.broadcast %3 : vector<1x512xf32> to vector<16x512xf32>
    %5 = arith.addf %2, %4 : vector<16x512xf32>
    %cst_5 = arith.constant 5.000000e-01 : f32
    %6 = vector.broadcast %cst_5 : f32 to vector<16x512xf32>
    %7 = arith.mulf %6, %5 : vector<16x512xf32>
    %cst_6 = arith.constant 4.471500e-02 : f32
    %8 = vector.broadcast %cst_6 : f32 to vector<16x512xf32>
    %9 = arith.mulf %8, %5 : vector<16x512xf32>
    %10 = arith.mulf %9, %5 : vector<16x512xf32>
    %11 = arith.mulf %10, %5 : vector<16x512xf32>
    %12 = arith.addf %5, %11 : vector<16x512xf32>
    %cst_7 = arith.constant 0.797884583 : f32
    %13 = vector.broadcast %cst_7 : f32 to vector<16x512xf32>
    %14 = arith.mulf %13, %12 : vector<16x512xf32>
    %15 = math.tanh %14 : vector<16x512xf32>
    %cst_8 = arith.constant 1.000000e+00 : f32
    %16 = vector.broadcast %cst_8 : f32 to vector<16x512xf32>
    %17 = arith.addf %16, %15 : vector<16x512xf32>
    %18 = arith.mulf %7, %17 : vector<16x512xf32>
    %19 = arith.truncf %18 : vector<16x512xf32> to vector<16x512xbf16>
    %c0_9 = arith.constant 0 : index
    %c0_10 = arith.constant 0 : index
    %20 = vector.load %arg5[%c0_9, %c0_10] : memref<16x512xbf16, #tpu.memory_space<vmem>>, vector<16x512xbf16>
    tpu.vector_store %arg5[%c0_9, %c0_10], %19 {strides = array<i32>} : memref<16x512xbf16, #tpu.memory_space<vmem>>, vector<16x512xbf16>,
    return
  }
  func.func @transform_0(%arg0: i32, %arg1: i32) -> (i32, i32) {
    %c0_i32 = arith.constant 0 : i32
    %c0_i32_0 = arith.constant 0 : i32
    return %arg0, %c0_i32 : i32, i32
  }
  func.func @transform_1(%arg0: i32, %arg1: i32) -> (i32, i32) {
    %c0_i32 = arith.constant 0 : i32
    %c0_i32_0 = arith.constant 0 : i32
    return %c0_i32, %arg1 : i32, i32
  }
  func.func @transform_2(%arg0: i32, %arg1: i32) -> (i32, i32) {
    %c0_i32 = arith.constant 0 : i32
    %c0_i32_0 = arith.constant 0 : i32
    return %c0_i32, %arg1 : i32, i32
  }
  func.func @transform_3(%arg0: i32, %arg1: i32) -> (i32, i32) {
    %c0_i32 = arith.constant 0 : i32
    return %arg0, %arg1 : i32, i32
  }
}

module attributes {stable_mosaic.version = 11 : i64} {
  func.func @_linear_add_ln_kernel(%arg0: i32, %arg1: memref<16x512xbf16, #tpu.memory_space<vmem>>, %arg2: memref<512x128xbf16, #tpu.memory_space<vmem>>, %arg3: memref<1x128xf32, #tpu.memory_space<vmem>>, %arg4: memref<16x128xbf16, #tpu.memory_space<vmem>>, %arg5: memref<1x128xf32, #tpu.memory_space<vmem>>, %arg6: memref<1x128xf32, #tpu.memory_space<vmem>>, %arg7: memref<16x128xbf16, #tpu.memory_space<vmem>>) attributes {dimension_semantics = [#tpu.dimension_semantics<parallel>], iteration_bounds = array<i64: 1>, scalar_prefetch = 0 : i64, scratch_operands = 0 : i64, tpu.core_type = #tpu.core_type<tc>, window_params = [{transform_indices = @transform_0, window_bounds = array<i64: 16, 512>}, {pipeline_mode = #tpu.pipeline_mode<synchronous>, transform_indices = @transform_1, window_bounds = array<i64: 512, 128>}, {pipeline_mode = #tpu.pipeline_mode<synchronous>, transform_indices = @transform_2, window_bounds = array<i64: 1, 128>}, {transform_indices = @transform_3, window_bounds = array<i64: 16, 128>}, {pipeline_mode = #tpu.pipeline_mode<synchronous>, transform_indices = @transform_4, window_bounds = array<i64: 1, 128>}, {pipeline_mode = #tpu.pipeline_mode<synchronous>, transform_indices = @transform_5, window_bounds = array<i64: 1, 128>}, {transform_indices = @transform_6, window_bounds = array<i64: 16, 128>}]} {
    %c0 = arith.constant 0 : index
    %c0_0 = arith.constant 0 : index
    %0 = vector.load %arg1[%c0, %c0_0] : memref<16x512xbf16, #tpu.memory_space<vmem>>, vector<16x512xbf16>
    %c0_1 = arith.constant 0 : index
    %c0_2 = arith.constant 0 : index
    %1 = vector.load %arg2[%c0_1, %c0_2] : memref<512x128xbf16, #tpu.memory_space<vmem>>, vector<512x128xbf16>
    %cst = arith.constant dense<0.000000e+00> : vector<16x128xf32>
    %2 = tpu.matmul %0, %1, %cst {dimension_numbers = #tpu.dot_dimension_numbers<[1], [0], [0], [1], [0, 0, 1, 1], [], []>} : vector<16x512xbf16>, vector<512x128xbf16>, vector<16x128xf32> -> vector<16x128xf32>
    %c0_3 = arith.constant 0 : index
    %c0_4 = arith.constant 0 : index
    %3 = vector.load %arg3[%c0_3, %c0_4] : memref<1x128xf32, #tpu.memory_space<vmem>>, vector<1x128xf32>
    %4 = vector.broadcast %3 : vector<1x128xf32> to vector<16x128xf32>
    %5 = arith.addf %2, %4 : vector<16x128xf32>
    %c0_5 = arith.constant 0 : index
    %c0_6 = arith.constant 0 : index
    %6 = vector.load %arg4[%c0_5, %c0_6] : memref<16x128xbf16, #tpu.memory_space<vmem>>, vector<16x128xbf16>
    %7 = arith.extf %6 : vector<16x128xbf16> to vector<16x128xf32>
    %8 = arith.addf %5, %7 : vector<16x128xf32>
    %cst_7 = arith.constant dense<0.000000e+00> : vector<16xf32>
    %9 = vector.multi_reduction <add>, %8, %cst_7 [1] : vector<16x128xf32> to vector<16xf32>
    %10 = vector.shape_cast %9 : vector<16xf32> to vector<16x1xf32>
    %cst_8 = arith.constant 1.280000e+02 : f32
    %11 = vector.broadcast %cst_8 : f32 to vector<16x1xf32>
    %12 = arith.divf %10, %11 : vector<16x1xf32>
    %13 = vector.broadcast %12 : vector<16x1xf32> to vector<16x128xf32>
    %14 = arith.subf %8, %13 : vector<16x128xf32>
    %15 = arith.mulf %14, %14 : vector<16x128xf32>
    %cst_9 = arith.constant dense<0.000000e+00> : vector<16xf32>
    %16 = vector.multi_reduction <add>, %15, %cst_9 [1] : vector<16x128xf32> to vector<16xf32>
    %17 = vector.shape_cast %16 : vector<16xf32> to vector<16x1xf32>
    %cst_10 = arith.constant 1.280000e+02 : f32
    %18 = vector.broadcast %cst_10 : f32 to vector<16x1xf32>
    %19 = arith.divf %17, %18 : vector<16x1xf32>
    %cst_11 = arith.constant 9.99999974E-6 : f32
    %20 = vector.broadcast %cst_11 : f32 to vector<16x1xf32>
    %21 = arith.addf %19, %20 : vector<16x1xf32>
    %22 = math.rsqrt %21 : vector<16x1xf32>
    %23 = vector.broadcast %12 : vector<16x1xf32> to vector<16x128xf32>
    %24 = arith.subf %8, %23 : vector<16x128xf32>
    %25 = vector.broadcast %22 : vector<16x1xf32> to vector<16x128xf32>
    %26 = arith.mulf %24, %25 : vector<16x128xf32>
    %c0_12 = arith.constant 0 : index
    %c0_13 = arith.constant 0 : index
    %27 = vector.load %arg5[%c0_12, %c0_13] : memref<1x128xf32, #tpu.memory_space<vmem>>, vector<1x128xf32>
    %28 = vector.broadcast %27 : vector<1x128xf32> to vector<16x128xf32>
    %29 = arith.mulf %26, %28 : vector<16x128xf32>
    %c0_14 = arith.constant 0 : index
    %c0_15 = arith.constant 0 : index
    %30 = vector.load %arg6[%c0_14, %c0_15] : memref<1x128xf32, #tpu.memory_space<vmem>>, vector<1x128xf32>
    %31 = vector.broadcast %30 : vector<1x128xf32> to vector<16x128xf32>
    %32 = arith.addf %29, %31 : vector<16x128xf32>
    %33 = arith.truncf %32 : vector<16x128xf32> to vector<16x128xbf16>
    %c0_16 = arith.constant 0 : index
    %c0_17 = arith.constant 0 : index
    %34 = vector.load %arg7[%c0_16, %c0_17] : memref<16x128xbf16, #tpu.memory_space<vmem>>, vector<16x128xbf16>
    tpu.vector_store %arg7[%c0_16, %c0_17], %33 {strides = array<i32>} : memref<16x128xbf16, #tpu.memory_space<vmem>>, vector<16x128xbf16>,
    return
  }
  func.func @transform_0(%arg0: i32) -> (i32, i32) {
    %c0_i32 = arith.constant 0 : i32
    %c0_i32_0 = arith.constant 0 : i32
    return %arg0, %c0_i32 : i32, i32
  }
  func.func @transform_1(%arg0: i32) -> (i32, i32) {
    %c0_i32 = arith.constant 0 : i32
    %c0_i32_0 = arith.constant 0 : i32
    %c0_i32_1 = arith.constant 0 : i32
    return %c0_i32, %c0_i32_0 : i32, i32
  }
  func.func @transform_2(%arg0: i32) -> (i32, i32) {
    %c0_i32 = arith.constant 0 : i32
    %c0_i32_0 = arith.constant 0 : i32
    %c0_i32_1 = arith.constant 0 : i32
    return %c0_i32, %c0_i32_0 : i32, i32
  }
  func.func @transform_3(%arg0: i32) -> (i32, i32) {
    %c0_i32 = arith.constant 0 : i32
    %c0_i32_0 = arith.constant 0 : i32
    return %arg0, %c0_i32 : i32, i32
  }
  func.func @transform_4(%arg0: i32) -> (i32, i32) {
    %c0_i32 = arith.constant 0 : i32
    %c0_i32_0 = arith.constant 0 : i32
    %c0_i32_1 = arith.constant 0 : i32
    return %c0_i32, %c0_i32_0 : i32, i32
  }
  func.func @transform_5(%arg0: i32) -> (i32, i32) {
    %c0_i32 = arith.constant 0 : i32
    %c0_i32_0 = arith.constant 0 : i32
    %c0_i32_1 = arith.constant 0 : i32
    return %c0_i32, %c0_i32_0 : i32, i32
  }
  func.func @transform_6(%arg0: i32) -> (i32, i32) {
    %c0_i32 = arith.constant 0 : i32
    %c0_i32_0 = arith.constant 0 : i32
    return %arg0, %c0_i32 : i32, i32
  }
}

module attributes {stable_mosaic.version = 11 : i64} {
  func.func @_linear_ln_kernel(%arg0: i32, %arg1: memref<16x128xbf16, #tpu.memory_space<vmem>>, %arg2: memref<128x128xbf16, #tpu.memory_space<vmem>>, %arg3: memref<1x128xf32, #tpu.memory_space<vmem>>, %arg4: memref<1x128xf32, #tpu.memory_space<vmem>>, %arg5: memref<1x128xf32, #tpu.memory_space<vmem>>, %arg6: memref<16x128xbf16, #tpu.memory_space<vmem>>) attributes {dimension_semantics = [#tpu.dimension_semantics<parallel>], iteration_bounds = array<i64: 1>, scalar_prefetch = 0 : i64, scratch_operands = 0 : i64, tpu.core_type = #tpu.core_type<tc>, window_params = [{transform_indices = @transform_0, window_bounds = array<i64: 16, 128>}, {pipeline_mode = #tpu.pipeline_mode<synchronous>, transform_indices = @transform_1, window_bounds = array<i64: 128, 128>}, {pipeline_mode = #tpu.pipeline_mode<synchronous>, transform_indices = @transform_2, window_bounds = array<i64: 1, 128>}, {pipeline_mode = #tpu.pipeline_mode<synchronous>, transform_indices = @transform_3, window_bounds = array<i64: 1, 128>}, {pipeline_mode = #tpu.pipeline_mode<synchronous>, transform_indices = @transform_4, window_bounds = array<i64: 1, 128>}, {transform_indices = @transform_5, window_bounds = array<i64: 16, 128>}]} {
    %c0 = arith.constant 0 : index
    %c0_0 = arith.constant 0 : index
    %0 = vector.load %arg1[%c0, %c0_0] : memref<16x128xbf16, #tpu.memory_space<vmem>>, vector<16x128xbf16>
    %c0_1 = arith.constant 0 : index
    %c0_2 = arith.constant 0 : index
    %1 = vector.load %arg2[%c0_1, %c0_2] : memref<128x128xbf16, #tpu.memory_space<vmem>>, vector<128x128xbf16>
    %cst = arith.constant dense<0.000000e+00> : vector<16x128xf32>
    %2 = tpu.matmul %0, %1, %cst {dimension_numbers = #tpu.dot_dimension_numbers<[1], [0], [0], [1], [0, 0, 1, 1], [], []>} : vector<16x128xbf16>, vector<128x128xbf16>, vector<16x128xf32> -> vector<16x128xf32>
    %c0_3 = arith.constant 0 : index
    %c0_4 = arith.constant 0 : index
    %3 = vector.load %arg3[%c0_3, %c0_4] : memref<1x128xf32, #tpu.memory_space<vmem>>, vector<1x128xf32>
    %4 = vector.broadcast %3 : vector<1x128xf32> to vector<16x128xf32>
    %5 = arith.addf %2, %4 : vector<16x128xf32>
    %cst_5 = arith.constant 5.000000e-01 : f32
    %6 = vector.broadcast %cst_5 : f32 to vector<16x128xf32>
    %7 = arith.mulf %6, %5 : vector<16x128xf32>
    %cst_6 = arith.constant 4.471500e-02 : f32
    %8 = vector.broadcast %cst_6 : f32 to vector<16x128xf32>
    %9 = arith.mulf %8, %5 : vector<16x128xf32>
    %10 = arith.mulf %9, %5 : vector<16x128xf32>
    %11 = arith.mulf %10, %5 : vector<16x128xf32>
    %12 = arith.addf %5, %11 : vector<16x128xf32>
    %cst_7 = arith.constant 0.797884583 : f32
    %13 = vector.broadcast %cst_7 : f32 to vector<16x128xf32>
    %14 = arith.mulf %13, %12 : vector<16x128xf32>
    %15 = math.tanh %14 : vector<16x128xf32>
    %cst_8 = arith.constant 1.000000e+00 : f32
    %16 = vector.broadcast %cst_8 : f32 to vector<16x128xf32>
    %17 = arith.addf %16, %15 : vector<16x128xf32>
    %18 = arith.mulf %7, %17 : vector<16x128xf32>
    %cst_9 = arith.constant dense<0.000000e+00> : vector<16xf32>
    %19 = vector.multi_reduction <add>, %18, %cst_9 [1] : vector<16x128xf32> to vector<16xf32>
    %20 = vector.shape_cast %19 : vector<16xf32> to vector<16x1xf32>
    %cst_10 = arith.constant 1.280000e+02 : f32
    %21 = vector.broadcast %cst_10 : f32 to vector<16x1xf32>
    %22 = arith.divf %20, %21 : vector<16x1xf32>
    %23 = vector.broadcast %22 : vector<16x1xf32> to vector<16x128xf32>
    %24 = arith.subf %18, %23 : vector<16x128xf32>
    %25 = arith.mulf %24, %24 : vector<16x128xf32>
    %cst_11 = arith.constant dense<0.000000e+00> : vector<16xf32>
    %26 = vector.multi_reduction <add>, %25, %cst_11 [1] : vector<16x128xf32> to vector<16xf32>
    %27 = vector.shape_cast %26 : vector<16xf32> to vector<16x1xf32>
    %cst_12 = arith.constant 1.280000e+02 : f32
    %28 = vector.broadcast %cst_12 : f32 to vector<16x1xf32>
    %29 = arith.divf %27, %28 : vector<16x1xf32>
    %cst_13 = arith.constant 9.99999974E-6 : f32
    %30 = vector.broadcast %cst_13 : f32 to vector<16x1xf32>
    %31 = arith.addf %29, %30 : vector<16x1xf32>
    %32 = math.rsqrt %31 : vector<16x1xf32>
    %33 = vector.broadcast %22 : vector<16x1xf32> to vector<16x128xf32>
    %34 = arith.subf %18, %33 : vector<16x128xf32>
    %35 = vector.broadcast %32 : vector<16x1xf32> to vector<16x128xf32>
    %36 = arith.mulf %34, %35 : vector<16x128xf32>
    %c0_14 = arith.constant 0 : index
    %c0_15 = arith.constant 0 : index
    %37 = vector.load %arg4[%c0_14, %c0_15] : memref<1x128xf32, #tpu.memory_space<vmem>>, vector<1x128xf32>
    %38 = vector.broadcast %37 : vector<1x128xf32> to vector<16x128xf32>
    %39 = arith.mulf %36, %38 : vector<16x128xf32>
    %c0_16 = arith.constant 0 : index
    %c0_17 = arith.constant 0 : index
    %40 = vector.load %arg5[%c0_16, %c0_17] : memref<1x128xf32, #tpu.memory_space<vmem>>, vector<1x128xf32>
    %41 = vector.broadcast %40 : vector<1x128xf32> to vector<16x128xf32>
    %42 = arith.addf %39, %41 : vector<16x128xf32>
    %43 = arith.truncf %42 : vector<16x128xf32> to vector<16x128xbf16>
    %c0_18 = arith.constant 0 : index
    %c0_19 = arith.constant 0 : index
    %44 = vector.load %arg6[%c0_18, %c0_19] : memref<16x128xbf16, #tpu.memory_space<vmem>>, vector<16x128xbf16>
    tpu.vector_store %arg6[%c0_18, %c0_19], %43 {strides = array<i32>} : memref<16x128xbf16, #tpu.memory_space<vmem>>, vector<16x128xbf16>,
    return
  }
  func.func @transform_0(%arg0: i32) -> (i32, i32) {
    %c0_i32 = arith.constant 0 : i32
    %c0_i32_0 = arith.constant 0 : i32
    return %arg0, %c0_i32 : i32, i32
  }
  func.func @transform_1(%arg0: i32) -> (i32, i32) {
    %c0_i32 = arith.constant 0 : i32
    %c0_i32_0 = arith.constant 0 : i32
    %c0_i32_1 = arith.constant 0 : i32
    return %c0_i32, %c0_i32_0 : i32, i32
  }
  func.func @transform_2(%arg0: i32) -> (i32, i32) {
    %c0_i32 = arith.constant 0 : i32
    %c0_i32_0 = arith.constant 0 : i32
    %c0_i32_1 = arith.constant 0 : i32
    return %c0_i32, %c0_i32_0 : i32, i32
  }
  func.func @transform_3(%arg0: i32) -> (i32, i32) {
    %c0_i32 = arith.constant 0 : i32
    %c0_i32_0 = arith.constant 0 : i32
    %c0_i32_1 = arith.constant 0 : i32
    return %c0_i32, %c0_i32_0 : i32, i32
  }
  func.func @transform_4(%arg0: i32) -> (i32, i32) {
    %c0_i32 = arith.constant 0 : i32
    %c0_i32_0 = arith.constant 0 : i32
    %c0_i32_1 = arith.constant 0 : i32
    return %c0_i32, %c0_i32_0 : i32, i32
  }
  func.func @transform_5(%arg0: i32) -> (i32, i32) {
    %c0_i32 = arith.constant 0 : i32
    %c0_i32_0 = arith.constant 0 : i32
    return %arg0, %c0_i32 : i32, i32
  }
}

module attributes {stable_mosaic.version = 11 : i64} {
  func.func @_linear_kernel(%arg0: i32, %arg1: i32, %arg2: memref<16x128xbf16, #tpu.memory_space<vmem>>, %arg3: memref<128x512xbf16, #tpu.memory_space<vmem>>, %arg4: memref<1x512xf32, #tpu.memory_space<vmem>>, %arg5: memref<16x512xf32, #tpu.memory_space<vmem>>) attributes {dimension_semantics = [#tpu.dimension_semantics<parallel>, #tpu.dimension_semantics<parallel>], iteration_bounds = array<i64: 1, 1>, scalar_prefetch = 0 : i64, scratch_operands = 0 : i64, tpu.core_type = #tpu.core_type<tc>, window_params = [{transform_indices = @transform_0, window_bounds = array<i64: 16, 128>}, {transform_indices = @transform_1, window_bounds = array<i64: 128, 512>}, {transform_indices = @transform_2, window_bounds = array<i64: 1, 512>}, {transform_indices = @transform_3, window_bounds = array<i64: 16, 512>}]} {
    %c0 = arith.constant 0 : index
    %c0_0 = arith.constant 0 : index
    %0 = vector.load %arg2[%c0, %c0_0] : memref<16x128xbf16, #tpu.memory_space<vmem>>, vector<16x128xbf16>
    %c0_1 = arith.constant 0 : index
    %c0_2 = arith.constant 0 : index
    %1 = vector.load %arg3[%c0_1, %c0_2] : memref<128x512xbf16, #tpu.memory_space<vmem>>, vector<128x512xbf16>
    %cst = arith.constant dense<0.000000e+00> : vector<16x512xf32>
    %2 = tpu.matmul %0, %1, %cst {dimension_numbers = #tpu.dot_dimension_numbers<[1], [0], [0], [1], [0, 0, 1, 1], [], []>} : vector<16x128xbf16>, vector<128x512xbf16>, vector<16x512xf32> -> vector<16x512xf32>
    %c0_3 = arith.constant 0 : index
    %c0_4 = arith.constant 0 : index
    %3 = vector.load %arg4[%c0_3, %c0_4] : memref<1x512xf32, #tpu.memory_space<vmem>>, vector<1x512xf32>
    %4 = vector.broadcast %3 : vector<1x512xf32> to vector<16x512xf32>
    %5 = arith.addf %2, %4 : vector<16x512xf32>
    %c0_5 = arith.constant 0 : index
    %c0_6 = arith.constant 0 : index
    %6 = vector.load %arg5[%c0_5, %c0_6] : memref<16x512xf32, #tpu.memory_space<vmem>>, vector<16x512xf32>
    tpu.vector_store %arg5[%c0_5, %c0_6], %5 {strides = array<i32>} : memref<16x512xf32, #tpu.memory_space<vmem>>, vector<16x512xf32>,
    return
  }
  func.func @transform_0(%arg0: i32, %arg1: i32) -> (i32, i32) {
    %c0_i32 = arith.constant 0 : i32
    %c0_i32_0 = arith.constant 0 : i32
    return %arg0, %c0_i32 : i32, i32
  }
  func.func @transform_1(%arg0: i32, %arg1: i32) -> (i32, i32) {
    %c0_i32 = arith.constant 0 : i32
    %c0_i32_0 = arith.constant 0 : i32
    return %c0_i32, %arg1 : i32, i32
  }
  func.func @transform_2(%arg0: i32, %arg1: i32) -> (i32, i32) {
    %c0_i32 = arith.constant 0 : i32
    %c0_i32_0 = arith.constant 0 : i32
    return %c0_i32, %arg1 : i32, i32
  }
  func.func @transform_3(%arg0: i32, %arg1: i32) -> (i32, i32) {
    %c0_i32 = arith.constant 0 : i32
    return %arg0, %arg1 : i32, i32
  }
}

module attributes {stable_mosaic.version = 11 : i64} {
  func.func @_linear_kernel(%arg0: i32, %arg1: i32, %arg2: memref<2x128xbf16, #tpu.memory_space<vmem>>, %arg3: memref<128x2xbf16, #tpu.memory_space<vmem>>, %arg4: memref<1x2xf32, #tpu.memory_space<vmem>>, %arg5: memref<2x2xf32, #tpu.memory_space<vmem>>) attributes {dimension_semantics = [#tpu.dimension_semantics<parallel>, #tpu.dimension_semantics<parallel>], iteration_bounds = array<i64: 1, 1>, scalar_prefetch = 0 : i64, scratch_operands = 0 : i64, tpu.core_type = #tpu.core_type<tc>, window_params = [{transform_indices = @transform_0, window_bounds = array<i64: 2, 128>}, {transform_indices = @transform_1, window_bounds = array<i64: 128, 2>}, {transform_indices = @transform_2, window_bounds = array<i64: 1, 2>}, {transform_indices = @transform_3, window_bounds = array<i64: 2, 2>}]} {
    %c0 = arith.constant 0 : index
    %c0_0 = arith.constant 0 : index
    %0 = vector.load %arg2[%c0, %c0_0] : memref<2x128xbf16, #tpu.memory_space<vmem>>, vector<2x128xbf16>
    %c0_1 = arith.constant 0 : index
    %c0_2 = arith.constant 0 : index
    %1 = vector.load %arg3[%c0_1, %c0_2] : memref<128x2xbf16, #tpu.memory_space<vmem>>, vector<128x2xbf16>
    %cst = arith.constant dense<0.000000e+00> : vector<2x2xf32>
    %2 = tpu.matmul %0, %1, %cst {dimension_numbers = #tpu.dot_dimension_numbers<[1], [0], [0], [1], [0, 0, 1, 1], [], []>} : vector<2x128xbf16>, vector<128x2xbf16>, vector<2x2xf32> -> vector<2x2xf32>
    %c0_3 = arith.constant 0 : index
    %c0_4 = arith.constant 0 : index
    %3 = vector.load %arg4[%c0_3, %c0_4] : memref<1x2xf32, #tpu.memory_space<vmem>>, vector<1x2xf32>
    %4 = vector.broadcast %3 : vector<1x2xf32> to vector<2x2xf32>
    %5 = arith.addf %2, %4 : vector<2x2xf32>
    %c0_5 = arith.constant 0 : index
    %c0_6 = arith.constant 0 : index
    %6 = vector.load %arg5[%c0_5, %c0_6] : memref<2x2xf32, #tpu.memory_space<vmem>>, vector<2x2xf32>
    tpu.vector_store %arg5[%c0_5, %c0_6], %5 {strides = array<i32>} : memref<2x2xf32, #tpu.memory_space<vmem>>, vector<2x2xf32>,
    return
  }
  func.func @transform_0(%arg0: i32, %arg1: i32) -> (i32, i32) {
    %c0_i32 = arith.constant 0 : i32
    %c0_i32_0 = arith.constant 0 : i32
    return %arg0, %c0_i32 : i32, i32
  }
  func.func @transform_1(%arg0: i32, %arg1: i32) -> (i32, i32) {
    %c0_i32 = arith.constant 0 : i32
    %c0_i32_0 = arith.constant 0 : i32
    return %c0_i32, %arg1 : i32, i32
  }
  func.func @transform_2(%arg0: i32, %arg1: i32) -> (i32, i32) {
    %c0_i32 = arith.constant 0 : i32
    %c0_i32_0 = arith.constant 0 : i32
    return %c0_i32, %arg1 : i32, i32
  }
  func.func @transform_3(%arg0: i32, %arg1: i32) -> (i32, i32) {
    %c0_i32 = arith.constant 0 : i32
    return %arg0, %arg1 : i32, i32
  }
}

</mosaic_0001>

<bundles_post_ra>
// kernel: bert_for_pretraining.14
= control target key start
LH: loop header
LB: loop body
LE: loop exit
PB: predicated region body
PF: predicated region fallthrough
CT: control target
= control target key end

     0   :  { %v97_v2 = vmov 128.0   ;;  %s133_s0 = inlined_call_operand.vmem [shape: f32[16,128], index: 0, kind: input, shape index: {}]   ;;  %s134_s1 = inlined_call_operand.vmem [shape: f32[1,128], index: 1, kind: input, shape index: {}]   ;;  %s135_s2 = inlined_call_operand.vmem [shape: f32[1,128], index: 2, kind: input, shape index: {}]   ;;  %s136_s3 = inlined_call_operand.vmem [shape: bf16[16,128], index: 3, kind: output, shape index: {}]  }
   0x1   :  { %v14_v0 = vld [vmem:[%s133_s0] sm:$0xff]  ;;  %v15_v1 = vld [vmem:[%s133_s0 + $0x8] sm:$0xff]  ;;  %91 = vrcp.f32 %v97_v2 }
   0x2   :  { %16 = vadd.xlane.f32.xlu0 %v14_v0  ;;  %v89_v35 = vld [vmem:[%s134_s1] ss:$0 sm:$0xff] }
   0x3   :  { %v90_v39 = vld [vmem:[%s135_s2] ss:$0 sm:$0xff] }
   0x7   :  { %v92_v3 = vpop.eup %91 }
   0x8   :  { %v21_v4 = vmul.f32 128.0, %v92_v3  ;;  %vm25_vm0 = vweird.f32 %v92_v3 }
   0xa   :  { %18 = vadd.xlane.f32.xlu0 %v15_v1  ;;  %v22_v5 = vsub.f32 1.0, %v21_v4 }
   0xc   :  { %v23_v6 = vmul.f32 %v92_v3, %v22_v5 }
   0xe   :  { %v24_v7 = vadd.f32 %v92_v3, %v23_v6 }
  0x10   :  { %v26_v8 = vsel %vm25_vm0, %v92_v3, %v24_v7 }
  0x75   :  { %v17_v9 = vpop.xlane.xlu0 %16 }
  0x76   :  { %v27_v10 = vmul.f32 %v26_v8, %v17_v9 }
  0x78   :  { %v29_v11 = vsub.f32 %v14_v0, %v27_v10 }
  0x7a   :  { %v31_v12 = vmul.f32 %v29_v11, %v29_v11 }
  0x7c   :  { %33 = vadd.xlane.f32.xlu1 %v31_v12 }
  0x7d   :  { %v19_v13 = vpop.xlane.xlu0 %18 }
  0x7e   :  { %v28_v14 = vmul.f32 %v26_v8, %v19_v13 }
  0x80   :  { %v30_v15 = vsub.f32 %v15_v1, %v28_v14 }
  0x82   :  { %v32_v16 = vmul.f32 %v30_v15, %v30_v15 }
  0x84   :  { %35 = vadd.xlane.f32.xlu1 %v32_v16 }
  0xef   :  { %v34_v17 = vpop.xlane.xlu1 %33 }
  0xf0   :  { %v37_v18 = vmul.f32 %v34_v17, %v26_v8 }
  0xf2   :  { %v39_v19 = vadd.f32 1e-05, %v37_v18 }
  0xf4   :  { %93 = vrsqrt.f32 %v39_v19  ;;  %vm47_vm2 = vweird.f32 %v39_v19 }
  0xf7   :  { %v36_v20 = vpop.xlane.xlu1 %35 }
  0xf8   :  { %v38_v21 = vmul.f32 %v36_v20, %v26_v8 }
  0xfa   :  { %v94_v22 = vpop.eup %93  ;;  %v40_v23 = vadd.f32 1e-05, %v38_v21 }
  0xfb   :  { %v42_v24 = vmul.f32 %v94_v22, %v39_v19  ;;  %vm48_vm1 = vweird.f32 %v94_v22 }
  0xfc   :  { %95 = vrsqrt.f32 %v40_v23  ;;  %vm49_vm3 = vmor %vm47_vm2, %vm48_vm1  ;;  %vm57_vm5 = vweird.f32 %v40_v23 }
  0xfd   :  { %v43_v25 = vmul.f32 %v94_v22, %v42_v24 }
  0xff   :  { %v44_v26 = vmul.f32 0.5, %v43_v25 }
 0x101   :  { %v45_v27 = vsub.f32 1.5, %v44_v26 }
 0x102   :  { %v96_v28 = vpop.eup %95 }
 0x103   :  { %v46_v29 = vmul.f32 %v94_v22, %v45_v27  ;;  %v52_v30 = vmul.f32 %v96_v28, %v40_v23  ;;  %vm58_vm4 = vweird.f32 %v96_v28 }
 0x104   :  { %vm59_vm6 = vmor %vm57_vm5, %vm58_vm4 }
 0x105   :  { %v53_v31 = vmul.f32 %v96_v28, %v52_v30  ;;  %v50_v32 = vsel %vm49_vm3, %v94_v22, %v46_v29 }
 0x106   :  { %v61_v36 = vmul.f32 %v50_v32, %v29_v11 }
 0x107   :  { %v54_v33 = vmul.f32 0.5, %v53_v31 }
 0x108   :  { %v67_v40 = vmul.f32 %v89_v35, %v61_v36 }
 0x109   :  { %v55_v34 = vsub.f32 1.5, %v54_v33 }
 0x10a   :  { %v73_v43 = vadd.f32 %v90_v39, %v67_v40 }
 0x10b   :  { %v56_v37 = vmul.f32 %v96_v28, %v55_v34 }
 0x10d   :  { %v60_v38 = vsel %vm59_vm6, %v96_v28, %v56_v37 }
 0x10e   :  { %v62_v41 = vmul.f32 %v60_v38, %v30_v15 }
 0x110   :  { %v68_v42 = vmul.f32 %v89_v35, %v62_v41 }
 0x112   :  { %v74_v44 = vadd.f32 %v90_v39, %v68_v42 }
 0x114   :  { %v86_v45 = vpack.c.bf16 %v74_v44, %v73_v43 }
 0x116   :  { %87 = vst [vmem:[%s136_s3] sm:$0xff] %v86_v45  }

// kernel: bert_for_pretraining.15
= control target key start
LH: loop header
LB: loop body
LE: loop exit
PB: predicated region body
PF: predicated region fallthrough
CT: control target
= control target key end

     0   :  { %8 = vsyncpa [#allocation3], 0  ;;  %s818_s0 = inlined_call_operand.vmem [shape: bf16[16,128], index: 0, kind: input, shape index: {}]   ;;  %s819_s1 = inlined_call_operand.hbm [shape: bf16[128,384], index: 1, kind: input, shape index: {}]   ;;  %s820_s2 = inlined_call_operand.vmem [shape: f32[1,384], index: 2, kind: input, shape index: {}]   ;;  %s821_s3 = inlined_call_operand.vmem [shape: bf16[16,384], index: 3, kind: output, shape index: {}]  }
   0x1   :  { %10 = vsyncpa [#allocation3 + $0x1], 0  ;;  %s712_s12 = smov 0   ;;  %s714_s13 = smov 0  }
   0x2   :  { %s716_s14 = smov 0   ;;  %s718_s15 = smov 0  }
   0x3   :  { %s720_s16 = smov 0   ;;  %s722_s17 = smov 0  }
   0x4 LB: > { %s484_s18 = sadd.s32 4294967295, %s687_s17   ;;  %s25_s19 = sadd.s32 1, %s683_s16  ;;  %s687_s17 = sphi %s722_s17, %s16_s17   ;;  %s683_s16 = sphi %s720_s16, %s829_s16   ;;  %s679_s15 = sphi %s718_s15, %s828_s15   ;;  %s675_s14 = sphi %s716_s14, %s827_s14   ;;  %s671_s13 = sphi %s714_s13, %s826_s13   ;;  %s667_s12 = sphi %s712_s12, %s825_s12  }
   0x5   : > { %p26_p0 = scmp.ge.s32.totalorder %s25_s19, 3  ;;  %s61_s20 = sadd.s32 1, %s675_s14 }
   0x6   : > { %p68_p1 = scmp.ne.s32.totalorder %s675_s14, %s671_s13  ;;  %p69_p2 = scmp.eq.s32.totalorder %s687_s17, 0 }
   0x7   : > { %s831_s19 = smov (%p26_p0, %s25_s19), 0  ;;  %p74_p4 = scmp.ne.s32.totalorder %s671_s13, %s667_s12 }
   0x8   : > { %p748_p3 = por %p69_p2, %p68_p1  ;;  %s58_s22 = ssub.s32 %s683_s16, %s831_s19 }
   0x9   : > { %p75_p5 = scmp.eq.s32.totalorder %s484_s18, 0  ;;  %p59_p6 = scmp.eq.s32.totalorder %s58_s22, 0 }
   0xa   : > { %p126_p7 = scmp.eq.s32.totalorder %s484_s18, 2  ;;  %p554_p10 = scmp.lt.s32.totalorder %s687_s17, 3 }
   0xb   : > { %p755_p8 = por %p75_p5, %p74_p4  ;;  %s161_s26 = sand.u32 1, %s675_s14  }
   0xc   : > { %s760_s24 = scalar_select %p59_p6, %s675_s14, %s61_s20  }
   0xd   : > { %p762_p9 = por %p126_p7, %p68_p1  ;;  %s490_s27 = sshll.u32 %s683_s16, 2 }
   0xe   : > { %s489_s28 = sshll.u32 %s161_s26, 6  ;;  %s169_s4 = scalar_lea.hbm %s819_s1, %s490_s27 }
   0xf   : > { %s170_s5 = sshll.u32 %s169_s4, 4  ;;  %s165_s6 = scalar_lea.vmem [#allocation2], %s489_s28  ;;  %s171_s5 = int_to_ptr.hbm [resolvable:$true] %s170_s5 }
  0x10   : > { %s172_s7 = sshll.u32 %s165_s6, 4  ;;  %p551_p11 = pnand %p554_p10, %p748_p3  ;;  %s173_s7 = int_to_ptr.vmem [resolvable:$true] %s172_s7 }
  0x11   : > { %p491_p12 = scmp.ge.s32.totalorder %s687_s17, 1  ;;  %s162_s8 = scalar_lea.sflag [#allocation3], %s161_s26 }
  0x12   : > { %s689_s9 = smov 192   ;;  %s690_s10 = smov 64  }
  0x13   : > { %s691_s11 = smov 4   ;;  %p186_p13 = scmp.lt.s32.totalorder %s687_s17, 4 }
  0x14   : > { %553 = dma.hbm_to_vmem [thread:$0]  (!%p551_p11), %s171_s5, 1024, %s173_s7, %s162_s8, %s689_s9, %s690_s10, %s691_s11  }
  0x15   : > { %p187_p0 = pnand %p491_p12, %p186_p13 }
  0x16   : > { %s777_s12 = sand.u32 (!%p187_p0), 1, %s671_s13  }
  0x17   : > { %190 = sbr.rel (%p187_p0) target bundleno = 209 (0xd1), region = 32  ;;  %s492_s18 = sshll.u32 (!%p187_p0), %s777_s12, 6 }
  0x18   : > { %s193_s20 = scalar_lea.sflag (!%p187_p0), [#allocation3], %s777_s12  ;;  %s196_s22 = scalar_lea.vmem (!%p187_p0), [#allocation2], %s492_s18 }
  0x1c   : > { %662 = dma.done.wait (%p755_p8), %s193_s20, 1024  }
  0x1d   : > { %664 = vsyncadd (%p755_p8), %s193_s20, 4294966272  ;;  %p233_p1 = scmp.lt.s32.totalorder %s679_s15, 2  ;;  %v542_v0 = vld [vmem:[%s196_s22 + $0x38] sm:$0xff]  ;;  %v541_v1 = vld [vmem:[%s196_s22 + $0x30] sm:$0xff]  ;;  %s493_s30 = sshll.u32 %s777_s12, 3 }
  0x1e   : > { %313 = vmatpush.bf16.msra.mxu0 %v542_v0  ;;  %v540_v2 = vld [vmem:[%s196_s22 + $0x28] sm:$0xff]  ;;  %v539_v3 = vld [vmem:[%s196_s22 + $0x20] sm:$0xff]  ;;  %v538_v4 = vld [vmem:[%s196_s22 + $0x18] sm:$0xff]  ;;  %s226_s4 = scalar_lea.vmem [#allocation4], %s493_s30  ;;  %s531_s5 = sshll.u32 (%p762_p9), %s679_s15, 2 }
  0x1f   : > { %s234_s21 = scalar_select %p233_p1, %s679_s15, 2  ;;  %v537_v5 = vld [vmem:[%s196_s22 + $0x10] sm:$0xff]  ;;  %v536_v6 = vld [vmem:[%s196_s22 + $0x8] sm:$0xff]  ;;  %v535_v7 = vld [vmem:[%s196_s22] sm:$0xff] }
  0x20   : > { %v534_v8 = vld [vmem:[%s818_s0] sm:$0xff]  ;;  %s342_s8 = scalar_lea.vmem (%p762_p9), %s821_s3, %s531_s5 }
  0x21   : > { %s235_s28 = scalar_lea.vmem %s820_s2, %s234_s21 }
  0x22   : > { %314 = vmatpush.bf16.msra.mxu0 %v541_v1  ;;  %v606_v10 = vld [vmem:[%s235_s28] ss:$0 sm:$0xff] }
  0x26   : > { %315 = vmatpush.bf16.msra.mxu0 %v540_v2 }
  0x2a   : > { %316 = vmatpush.bf16.msra.mxu0 %v539_v3 }
  0x2e   : > { %317 = vmatpush.bf16.msra.mxu0 %v538_v4 }
  0x32   : > { %318 = vmatpush.bf16.msra.mxu0 %v537_v5 }
  0x36   : > { %319 = vmatpush.bf16.msra.mxu0 %v536_v6 }
  0x3a   : > { %320 = vmatpush.bf16.msra.mxu0 %v535_v7 }
  0x3d   : > { %321 = vmatmul.bf16.vlgmr.msra.gmra.mxu0 %v534_v8 }
  0xba   : > { %v322_v9 = vpop.f32.mrf.mxu0 }
  0xbb   : > { %v323_v12 = vadd.f32 %v606_v10, %v322_v9 }
  0xc2   : > { %v324_v11 = vpop.f32.mrf.mxu0 }
  0xc3   : > { %v325_v13 = vadd.f32 %v606_v10, %v324_v11  ;;  %337 = sbr.rel (!%p762_p9) target bundleno = 209 (0xd1), region = 40 }
  0xc5   : > { %v546_v14 = vpack.c.bf16 %v325_v13, %v323_v12 }
  0xc7   : > { %547 = vst [vmem:[%s226_s4] sm:$0xff] %v546_v14  }
  0xce   : > { %v359_v15 = vld [vmem:[%s226_s4] sm:$0xf]  ;;  %v361_v16 = vld [vmem:[%s226_s4 + $0x4] sm:$0xf] }
  0xcf   : > { %360 = vst [vmem:[%s342_s8] sm:$0xf] %v359_v15 }
  0xd0   : > { %362 = vst [vmem:[%s342_s8 + $0xc] sm:$0xf] %v361_v16 }
  0xd1 PF: > { %s16_s17 = sadd.s32 1, %s687_s17   ;;  %s825_s12 = smov %s671_s13 }
  0xd2   : > { %p13_p2 = scmp.ge.s32.totalorder %s16_s17, 5   ;;  %s826_s13 = smov %s675_s14 }
  0xd3   : > { %s827_s14 = smov %s760_s24  ;;  %s828_s15 = smov %s683_s16 }
  0xd4   : > { %s829_s16 = smov %s831_s19  ;;  %15 = sbr.rel (!%p13_p2) target bundleno = 4 (0x4), region = 119 }
  0xd9   :  { %400 = vsyncpa [#allocation3], 1 }
  0xda   :  { %402 = vsyncpa [#allocation3 + $0x1], 1 }

// kernel: bert_for_pretraining.17
= control target key start
LH: loop header
LB: loop body
LE: loop exit
PB: predicated region body
PF: predicated region fallthrough
CT: control target
= control target key end

     0   :  { %v250_v19 = vmov 128.0   ;;  %s328_s1 = inlined_call_operand.vmem [shape: bf16[128,128], index: 1, kind: input, shape index: {}]   ;;  %s329_s2 = inlined_call_operand.vmem [shape: f32[1,128], index: 2, kind: input, shape index: {}]   ;;  %s330_s0 = inlined_call_operand.vmem [shape: bf16[16,128], index: 0, kind: input, shape index: {}]   ;;  %s331_s3 = inlined_call_operand.vmem [shape: bf16[16,128], index: 3, kind: input, shape index: {}]   ;;  %s332_s4 = inlined_call_operand.vmem [shape: f32[1,128], index: 4, kind: input, shape index: {}]   ;;  %s333_s5 = inlined_call_operand.vmem [shape: f32[1,128], index: 5, kind: input, shape index: {}]   ;;  %s334_s6 = inlined_call_operand.vmem [shape: bf16[16,128], index: 6, kind: output, shape index: {}]  }
   0x1   :  { %v230_v0 = vld [vmem:[%s328_s1 + $0x38] sm:$0xff]  ;;  %v229_v1 = vld [vmem:[%s328_s1 + $0x30] sm:$0xff]  ;;  %v228_v2 = vld [vmem:[%s328_s1 + $0x28] sm:$0xff]  ;;  %244 = vrcp.f32 %v250_v19 }
   0x2   :  { %99 = vmatpush.bf16.msra.mxu0 %v230_v0  ;;  %v227_v3 = vld [vmem:[%s328_s1 + $0x20] sm:$0xff]  ;;  %v226_v4 = vld [vmem:[%s328_s1 + $0x18] sm:$0xff]  ;;  %v225_v5 = vld [vmem:[%s328_s1 + $0x10] sm:$0xff] }
   0x3   :  { %v224_v6 = vld [vmem:[%s328_s1 + $0x8] sm:$0xff]  ;;  %v223_v7 = vld [vmem:[%s328_s1] sm:$0xff] }
   0x4   :  { %v222_v8 = vld [vmem:[%s330_s0] sm:$0xff] }
   0x5   :  { %v232_v9 = vld [vmem:[%s331_s3] sm:$0xff]  }
   0x6   :  { %100 = vmatpush.bf16.msra.mxu0 %v229_v1  ;;  %v241_v10 = vld [vmem:[%s329_s2] ss:$0 sm:$0xff]  ;;  %v233_v11 = vunpack.c.l.bf16 %v232_v9  ;;  %v234_v15 = vunpack.c.h.bf16 %v232_v9 }
   0x7   :  { %v245_v20 = vpop.eup %244  ;;  %v242_v52 = vld [vmem:[%s332_s4] ss:$0 sm:$0xff] }
   0x8   :  { %v124_v21 = vmul.f32 128.0, %v245_v20  ;;  %vm128_vm0 = vweird.f32 %v245_v20  ;;  %v243_v56 = vld [vmem:[%s333_s5] ss:$0 sm:$0xff] }
   0xa   :  { %101 = vmatpush.bf16.msra.mxu0 %v228_v2  ;;  %v125_v22 = vsub.f32 1.0, %v124_v21 }
   0xc   :  { %v126_v23 = vmul.f32 %v245_v20, %v125_v22 }
   0xe   :  { %102 = vmatpush.bf16.msra.mxu0 %v227_v3  ;;  %v127_v24 = vadd.f32 %v245_v20, %v126_v23 }
  0x10   :  { %v129_v25 = vsel %vm128_vm0, %v245_v20, %v127_v24 }
  0x12   :  { %103 = vmatpush.bf16.msra.mxu0 %v226_v4 }
  0x16   :  { %104 = vmatpush.bf16.msra.mxu0 %v225_v5 }
  0x1a   :  { %105 = vmatpush.bf16.msra.mxu0 %v224_v6 }
  0x1e   :  { %106 = vmatpush.bf16.msra.mxu0 %v223_v7 }
  0x21   :  { %107 = vmatmul.bf16.vlgmr.msra.gmra.mxu0 %v222_v8 }
  0x9e   :  { %v108_v12 = vpop.f32.mrf.mxu0 }
  0x9f   :  { %v109_v13 = vadd.f32 %v241_v10, %v108_v12 }
  0xa1   :  { %v117_v14 = vadd.f32 %v233_v11, %v109_v13 }
  0xa3   :  { %119 = vadd.xlane.f32.xlu0 %v117_v14 }
  0xa6   :  { %v110_v16 = vpop.f32.mrf.mxu0 }
  0xa7   :  { %v111_v17 = vadd.f32 %v241_v10, %v110_v16 }
  0xa9   :  { %v118_v18 = vadd.f32 %v234_v15, %v111_v17 }
  0xab   :  { %121 = vadd.xlane.f32.xlu0 %v118_v18 }
 0x116   :  { %v120_v26 = vpop.xlane.xlu0 %119 }
 0x117   :  { %v130_v27 = vmul.f32 %v129_v25, %v120_v26 }
 0x119   :  { %v132_v28 = vsub.f32 %v117_v14, %v130_v27 }
 0x11b   :  { %v134_v29 = vmul.f32 %v132_v28, %v132_v28 }
 0x11d   :  { %136 = vadd.xlane.f32.xlu1 %v134_v29 }
 0x11e   :  { %v122_v30 = vpop.xlane.xlu0 %121 }
 0x11f   :  { %v131_v31 = vmul.f32 %v129_v25, %v122_v30 }
 0x121   :  { %v133_v32 = vsub.f32 %v118_v18, %v131_v31 }
 0x123   :  { %v135_v33 = vmul.f32 %v133_v32, %v133_v32 }
 0x125   :  { %138 = vadd.xlane.f32.xlu1 %v135_v33 }
 0x190   :  { %v137_v34 = vpop.xlane.xlu1 %136 }
 0x191   :  { %v140_v35 = vmul.f32 %v137_v34, %v129_v25 }
 0x193   :  { %v142_v36 = vadd.f32 1e-05, %v140_v35 }
 0x195   :  { %246 = vrsqrt.f32 %v142_v36  ;;  %vm150_vm2 = vweird.f32 %v142_v36 }
 0x198   :  { %v139_v37 = vpop.xlane.xlu1 %138 }
 0x199   :  { %v141_v38 = vmul.f32 %v139_v37, %v129_v25 }
 0x19b   :  { %v247_v39 = vpop.eup %246  ;;  %v143_v40 = vadd.f32 1e-05, %v141_v38 }
 0x19c   :  { %v145_v41 = vmul.f32 %v247_v39, %v142_v36  ;;  %vm151_vm1 = vweird.f32 %v247_v39 }
 0x19d   :  { %248 = vrsqrt.f32 %v143_v40  ;;  %vm152_vm3 = vmor %vm150_vm2, %vm151_vm1  ;;  %vm160_vm5 = vweird.f32 %v143_v40 }
 0x19e   :  { %v146_v42 = vmul.f32 %v247_v39, %v145_v41 }
 0x1a0   :  { %v147_v43 = vmul.f32 0.5, %v146_v42 }
 0x1a2   :  { %v148_v44 = vsub.f32 1.5, %v147_v43 }
 0x1a3   :  { %v249_v45 = vpop.eup %248 }
 0x1a4   :  { %v149_v46 = vmul.f32 %v247_v39, %v148_v44  ;;  %v155_v47 = vmul.f32 %v249_v45, %v143_v40  ;;  %vm161_vm4 = vweird.f32 %v249_v45 }
 0x1a5   :  { %vm162_vm6 = vmor %vm160_vm5, %vm161_vm4 }
 0x1a6   :  { %v156_v48 = vmul.f32 %v249_v45, %v155_v47  ;;  %v153_v49 = vsel %vm152_vm3, %v247_v39, %v149_v46 }
 0x1a7   :  { %v164_v53 = vmul.f32 %v153_v49, %v132_v28 }
 0x1a8   :  { %v157_v50 = vmul.f32 0.5, %v156_v48 }
 0x1a9   :  { %v170_v57 = vmul.f32 %v242_v52, %v164_v53 }
 0x1aa   :  { %v158_v51 = vsub.f32 1.5, %v157_v50 }
 0x1ab   :  { %v176_v60 = vadd.f32 %v243_v56, %v170_v57 }
 0x1ac   :  { %v159_v54 = vmul.f32 %v249_v45, %v158_v51 }
 0x1ae   :  { %v163_v55 = vsel %vm162_vm6, %v249_v45, %v159_v54 }
 0x1af   :  { %v165_v58 = vmul.f32 %v163_v55, %v133_v32 }
 0x1b1   :  { %v171_v59 = vmul.f32 %v242_v52, %v165_v58 }
 0x1b3   :  { %v177_v61 = vadd.f32 %v243_v56, %v171_v59 }
 0x1b5   :  { %v238_v62 = vpack.c.bf16 %v177_v61, %v176_v60 }
 0x1b7   :  { %239 = vst [vmem:[%s334_s6] sm:$0xff] %v238_v62  }

// kernel: bert_for_pretraining.16
= control target key start
LH: loop header
LB: loop body
LE: loop exit
PB: predicated region body
PF: predicated region fallthrough
CT: control target
= control target key end

     0   :  { %s487_s6 = smov 0   ;;  %s553_s0 = inlined_call_operand.vmem [shape: bf16[2,8,384], index: 0, kind: input, shape index: {}]   ;;  %s554_s1 = inlined_call_operand.vmem [shape: bf16[2,8,128], index: 1, kind: output, shape index: {}]  }
   0x1 LB: > { %s421_s7 = sadd.s32 4294967295, %s472_s6   ;;  %p425_p0 = scmp.ge.s32.totalorder %s472_s6, 1  ;;  %s472_s6 = sphi %s487_s6, %s11_s6  }
   0x2   : > { %p87_p1 = scmp.lt.s32.totalorder %s472_s6, 3 }
   0x4   : > { %p88_p2 = pnand %p425_p0, %p87_p1 }
   0x5   : > { %p106_p3 = scmp.lt.s32.totalorder (!%p88_p2), %s421_s7, 1  ;;  %s474_s12 = smov (!%p88_p2), 64  }
   0x6   : > { %91 = sbr.rel (%p88_p2) target bundleno = 1078 (0x436), region = 24  ;;  %s475_s13 = smov (!%p88_p2), 32  }
   0x7   : > { %s476_s14 = smov (!%p88_p2), 96  }
   0xb   : > { %s556_s7 = smov (!%p106_p3, %s421_s7), 1  ;;  %vm119_vm0 = vcmask 261120   ;;  %vm139_vm1 = vcmask 64512   ;;  %vm155_vm2 = vcmask 1043456   ;;  %vm362_vm3 = vcmask 523264  }
   0xc   : > { %s438_s8 = smul.u32 12, %s556_s7  ;;  %s427_s15 = sshll.u32 %s556_s7, 2  ;;  %vm364_vm4 = vcmask 785408  }
   0xd   : > { %s114_s18 = scalar_lea.vmem %s554_s1, %s427_s15 }
   0xe   : > { %s501_s11 = scalar_lea.vmem %s553_s0, %s438_s8 }
   0xf   : > { %v117_v0 = vld [vmem:[%s501_s11 + $0x4] sm:$0xf]  ;;  %v116_v2 = vld [vmem:[%s501_s11] sm:$0xf]  ;;  %v118_v20 = vld [vmem:[%s501_s11 + $0x8] sm:$0xf] }
  0x10   : > { %v124_v1 = vsel %vm119_vm0, %v117_v0, 0  ;;  %v178_v3 = vunpack.c.l.b16 %v117_v0  ;;  %v173_v5 = vunpack.c.l.b16 %v116_v2  ;;  %v157_v21 = vsel %vm155_vm2, %v118_v20, 0 }
  0x11   : > { %133 = vmatpush.bf16.xpose.msra.mxu0 %v124_v1  ;;  %166 = vmatpush.bf16.msra.mxu1 %v157_v21  ;;  %v214_v41 = vunpack.c.l.b16 %v118_v20 }
  0x12   : > { %v179_v4 = vpack.c.b16 %v178_v3, %v178_v3  ;;  %v174_v6 = vpack.c.b16 %v173_v5, %v173_v5 }
  0x13   : > { %v215_v42 = vpack.c.b16 %v214_v41, %v214_v41 }
  0x14   : > { %239 = vrot.lane.b32.xlu2 %v179_v4, %s474_s12 }
  0x18   : > { %428 = vmatmul.msk.bf16.vlgmr.msra.gmra.mxu0 %vm119_vm0, %v116_v2 }
  0x1c   : > { %295 = vrot.lane.b32.xlu2 %v179_v4, %s475_s13 }
  0x24   : > { %237 = vrot.lane.b32.xlu2 %v174_v6, %s474_s12 }
  0x2c   : > { %293 = vrot.lane.b32.xlu2 %v174_v6, %s475_s13 }
  0x6e   : > { %v240_v10 = vpop.permute.xlu2 %239 }
  0x6f   : > { %v245_v22 = vsel %vm119_vm0, %v240_v10, 0 }
  0x70   : > { %254 = vmatpush.bf16.xpose.msrb.mxu1 %v245_v22 }
  0x76   : > { %v296_v11 = vpop.permute.xlu2 %295 }
  0x77   : > { %v301_v16 = vsel %vm119_vm0, %v296_v11, 0 }
  0x78   : > { %310 = vmatpush.bf16.xpose.msrb.mxu0 %v301_v16 }
  0x7e   : > { %v238_v15 = vpop.permute.xlu2 %237 }
  0x86   : > { %v294_v19 = vpop.permute.xlu2 %293 }
  0x87   : > { %434 = vmatmul.msk.bf16.vlgmr.msrb.gmra.mxu0 %vm119_vm0, %v294_v19 }
  0x95   : > { %v135_v7 = vpop.f32.mrf.mxu0 }
  0x96   : > { %v140_v8 = vsel %vm139_vm1, %v135_v7, -inf }
  0x97   : > { %141 = vmax.xlane.f32.xlu0 %v140_v8 }
  0x9d   : > { %v137_v9 = vpop.f32.mrf.mxu0 }
  0xab   : > { %180 = vrot.lane.b32.xlu0 %v179_v4, %s476_s14 }
 0x104   : > { %v312_v29 = vpop.f32.mrf.mxu0 }
 0x105   : > { %v316_v30 = vsel %vm139_vm1, %v312_v29, -inf }
 0x10a   : > { %v142_v12 = vpop.xlane.xlu0 %141 }
 0x10b   : > { %v143_v13 = vsub.f32 %v135_v7, %v142_v12 }
 0x10c   : > { %v314_v31 = vpop.f32.mrf.mxu0 }
 0x10d   : > { %v144_v14 = vmul.f32 1.442695, %v143_v13 }
 0x10f   : > { %450 = vpow2.f32 %v144_v14 }
 0x115   : > { %v451_v17 = vpop.eup %450 }
 0x116   : > { %v146_v18 = vsel %vm139_vm1, %v451_v17, 0.0 }
 0x117   : > { %147 = vadd.xlane.f32.xlu1 %v146_v18 }
 0x11d   : > { %v181_v23 = vpop.permute.xlu0 %180 }
 0x11e   : > { %v186_v24 = vsel %vm119_vm0, %v181_v23, 0 }
 0x11f   : > { %195 = vmatpush.bf16.xpose.msra.mxu2 %v186_v24 }
 0x130   : > { %175 = vrot.lane.b32.xlu1 %v174_v6, %s476_s14 }
 0x15a   : > { %317 = vmax.xlane.f32.xlu1 %v316_v30 }
 0x18a   : > { %v148_v25 = vpop.xlane.xlu1 %147 }
 0x18b   : > { %452 = vrcp.f32 %v148_v25 }
 0x191   : > { %v453_v26 = vpop.eup %452 }
 0x192   : > { %v150_v27 = vmul.f32 %v453_v26, %v451_v17 }
 0x194   : > { %v151_v28 = vpack.c.bf16 %v150_v27, %v150_v27 }
 0x196   : > { %429 = vmatmul.msk.bf16.vlgmr.msra.gmra.mxu1 %vm139_vm1, %v151_v28 }
 0x1a2   : > { %v176_v32 = vpop.permute.xlu1 %175 }
 0x1a3   : > { %430 = vmatmul.msk.bf16.vlgmr.msra.gmra.mxu2 %vm119_vm0, %v176_v32 }
 0x1a6   : > { %432 = vmatmul.msk.bf16.vlgmr.msrb.gmra.mxu1 %vm119_vm0, %v238_v15 }
 0x1cd   : > { %v318_v45 = vpop.xlane.xlu1 %317 }
 0x1ce   : > { %v319_v49 = vsub.f32 %v312_v29, %v318_v45 }
 0x1d0   : > { %v320_v51 = vmul.f32 1.442695, %v319_v49 }
 0x213   : > { %v525_v33 = vpop.f32.mrf.mxu1 }
 0x21b   : > { %v170_v34 = vpop.f32.mrf.mxu1 }
 0x223   : > { %v256_v35 = vpop.f32.mrf.mxu1 }
 0x224   : > { %v260_v36 = vsel %vm139_vm1, %v256_v35, -inf }
 0x225   : > { %261 = vmax.xlane.f32.xlu2 %v260_v36 }
 0x226   : > { %v197_v37 = vpop.f32.mrf.mxu2 }
 0x227   : > { %v201_v38 = vsel %vm139_vm1, %v197_v37, -inf }
 0x228   : > { %202 = vmax.xlane.f32.xlu0 %v201_v38 }
 0x22b   : > { %v258_v39 = vpop.f32.mrf.mxu1 }
 0x22e   : > { %v199_v40 = vpop.f32.mrf.mxu2 }
 0x23d   : > { %216 = vrot.lane.b32.xlu2 %v215_v42, %s476_s14 }
 0x298   : > { %v262_v43 = vpop.xlane.xlu2 %261 }
 0x299   : > { %v263_v44 = vsub.f32 %v256_v35, %v262_v43 }
 0x29b   : > { %v264_v46 = vmul.f32 1.442695, %v263_v44  ;;  %v203_v47 = vpop.xlane.xlu0 %202 }
 0x29c   : > { %v204_v48 = vsub.f32 %v197_v37, %v203_v47 }
 0x29d   : > { %454 = vpow2.f32 %v264_v46 }
 0x29e   : > { %v205_v50 = vmul.f32 1.442695, %v204_v48 }
 0x2a0   : > { %456 = vpow2.f32 %v205_v50  ;;  %v217_v58 = vpop.permute.xlu2 %216 }
 0x2a1   : > { %458 = vpow2.f32 %v320_v51  ;;  %v222_v59 = vsel %vm155_vm2, %v217_v58, 0 }
 0x2a2   : > { %231 = vmatpush.bf16.msra.mxu3 %v222_v59 }
 0x2a3   : > { %v455_v52 = vpop.eup %454 }
 0x2a4   : > { %v266_v53 = vsel %vm139_vm1, %v455_v52, 0.0 }
 0x2a5   : > { %267 = vadd.xlane.f32.xlu1 %v266_v53 }
 0x2a6   : > { %v457_v54 = vpop.eup %456 }
 0x2a7   : > { %v207_v55 = vsel %vm139_vm1, %v457_v54, 0.0  ;;  %v459_v56 = vpop.eup %458 }
 0x2a8   : > { %208 = vadd.xlane.f32.xlu0 %v207_v55  ;;  %v322_v57 = vsel %vm139_vm1, %v459_v56, 0.0 }
 0x2b0   : > { %323 = vadd.xlane.f32.xlu0 %v322_v57 }
 0x2be   : > { %272 = vrot.lane.b32.xlu1 %v215_v42, %s474_s12 }
 0x2c4   : > { %328 = vrot.lane.b32.xlu0 %v215_v42, %s475_s13 }
 0x318   : > { %v268_v63 = vpop.xlane.xlu1 %267 }
 0x31b   : > { %v209_v60 = vpop.xlane.xlu0 %208 }
 0x31c   : > { %460 = vrcp.f32 %v209_v60 }
 0x31d   : > { %462 = vrcp.f32 %v268_v63 }
 0x322   : > { %v461_v61 = vpop.eup %460 }
 0x323   : > { %v211_v62 = vmul.f32 %v461_v61, %v457_v54  ;;  %v324_v1 = vpop.xlane.xlu0 %323  ;;  %v463_v2 = vpop.eup %462 }
 0x324   : > { %464 = vrcp.f32 %v324_v1  ;;  %v270_v4 = vmul.f32 %v463_v2, %v455_v52 }
 0x325   : > { %v212_v0 = vpack.c.bf16 %v211_v62, %v211_v62 }
 0x326   : > { %v271_v8 = vpack.c.bf16 %v270_v4, %v270_v4 }
 0x327   : > { %431 = vmatmul.msk.bf16.vlgmr.msra.gmra.mxu3 %vm139_vm1, %v212_v0 }
 0x32a   : > { %v465_v6 = vpop.eup %464 }
 0x32b   : > { %v326_v7 = vmul.f32 %v465_v6, %v459_v56 }
 0x32d   : > { %v327_v11 = vpack.c.bf16 %v326_v7, %v326_v7 }
 0x330   : > { %v273_v3 = vpop.permute.xlu1 %272 }
 0x331   : > { %v278_v5 = vsel %vm155_vm2, %v273_v3, 0 }
 0x332   : > { %287 = vmatpush.bf16.msrb.mxu3 %v278_v5 }
 0x336   : > { %v329_v9 = vpop.permute.xlu0 %328 }
 0x337   : > { %433 = vmatmul.msk.bf16.vlgmr.msrb.gmra.mxu3 %vm139_vm1, %v271_v8  ;;  %v334_v10 = vsel %vm155_vm2, %v329_v9, 0 }
 0x338   : > { %343 = vmatpush.bf16.msrb.mxu2 %v334_v10 }
 0x33b   : > { %435 = vmatmul.msk.bf16.vlgmr.msrb.gmra.mxu2 %vm139_vm1, %v327_v11 }
 0x3aa   : > { %v233_v12 = vpop.f32.mrf.mxu3 }
 0x3ab   : > { %350 = vrot.lane.b32.xlu2 %v233_v12, %s475_s13 }
 0x3b2   : > { %v235_v13 = vpop.f32.mrf.mxu3 }
 0x3ba   : > { %v289_v14 = vpop.f32.mrf.mxu3 }
 0x3bb   : > { %354 = vrot.lane.b32.xlu2 %v289_v14, %s474_s12 }
 0x3be   : > { %v345_v15 = vpop.f32.mrf.mxu2 }
 0x3bf   : > { %358 = vrot.lane.b32.xlu0 %v345_v15, %s476_s14 }
 0x3c2   : > { %v291_v16 = vpop.f32.mrf.mxu3 }
 0x3c6   : > { %v347_v17 = vpop.f32.mrf.mxu2 }
 0x405   : > { %v351_v18 = vpop.permute.xlu2 %350 }
 0x406   : > { %v361_v20 = vsel %vm119_vm0, %v525_v33, %v351_v18 }
 0x415   : > { %v355_v19 = vpop.permute.xlu2 %354 }
 0x416   : > { %v363_v21 = vsel %vm362_vm3, %v361_v20, %v355_v19 }
 0x431   : > { %v359_v22 = vpop.permute.xlu0 %358 }
 0x432   : > { %v365_v23 = vsel %vm364_vm4, %v363_v21, %v359_v22 }
 0x433   : > { %v366_v24 = vpack.c.bf16 %v365_v23, %v365_v23 }
 0x435   : > { %367 = vst [vmem:[%s114_s18] sm:$0xf] %v366_v24 }
 0x436 PF: > { %s11_s6 = sadd.s32 1, %s472_s6  }
 0x437   : > { %p8_p4 = scmp.ge.s32.totalorder %s11_s6, 4  }
 0x439   :  { %10 = sbr.rel (!%p8_p4) target bundleno = 1 (0x1), region = 54 }

// kernel: bert_for_pretraining.18
= control target key start
LH: loop header
LB: loop body
LE: loop exit
PB: predicated region body
PF: predicated region fallthrough
CT: control target
= control target key end

     0   :  { %8 = vsyncpa [#allocation3], 0  ;;  %s591_s15 = smov [#allocation2]   ;;  %s592_s17 = smov 256   ;;  %s649_s0 = inlined_call_operand.vmem [shape: bf16[16,128], index: 0, kind: input, shape index: {}]   ;;  %s650_s1 = inlined_call_operand.hbm [shape: bf16[128,512], index: 1, kind: input, shape index: {}]   ;;  %s651_s2 = inlined_call_operand.vmem [shape: f32[1,512], index: 2, kind: input, shape index: {}]   ;;  %s652_s3 = inlined_call_operand.vmem [shape: bf16[16,512], index: 3, kind: output, shape index: {}]  }
   0x1   :  { %s15_s14 = sshll.u32 %s650_s1, 4  ;;  %s17_s16 = sshll.u32 %s591_s15, 4  ;;  %s16_s14 = int_to_ptr.hbm [resolvable:$true] %s15_s14  ;;  %s18_s16 = int_to_ptr.vmem [resolvable:$true] %s17_s16 }
   0x2   :  { %s593_s18 = smov 16  }
   0x3   :  { %23 = dma.hbm_to_vmem [thread:$0]  %s16_s14, 4096, %s18_s16, [#allocation3], %s592_s17, %s592_s17, %s593_s18  }
   0x4   :  { %589 = dma.done.wait [#allocation3], 4096  }
   0x5   :  { %590 = vsyncadd [#allocation3], 4294963200  ;;  %v499_v0 = vld [vmem:[#allocation2 + $0xe0] sm:$0xf]  ;;  %v544_v1 = vld [vmem:[#allocation2 + $0xec] sm:$0xf0] }
   0x6   :  { %v542_v2 = vld [vmem:[#allocation2 + $0xe4] sm:$0xf]  ;;  %v500_v3 = vor.u32 %v544_v1, %v499_v0  ;;  %v501_v4 = vld [vmem:[#allocation2 + $0xf0] sm:$0xf0]  ;;  %v507_v5 = vld [vmem:[#allocation2 + $0xe8] sm:$0xf] }
   0x7   :  { %v545_v6 = vld [vmem:[#allocation2 + $0xf4] sm:$0xf0]  ;;  %v504_v7 = vor.u32 %v542_v2, %v501_v4  ;;  %v543_v9 = vld [vmem:[#allocation2 + $0xec] sm:$0xf]  ;;  %v509_v10 = vld [vmem:[#allocation2 + $0xf8] sm:$0xf0] }
   0x8   :  { %v508_v8 = vor.u32 %v545_v6, %v507_v5  ;;  %v483_v11 = vld [vmem:[#allocation2 + $0xc0] sm:$0xf]  ;;  %240 = vmatpush.bf16.msra.mxu0 %v500_v3  ;;  %v512_v12 = vor.u32 %v543_v9, %v509_v10  ;;  %v540_v13 = vld [vmem:[#allocation2 + $0xcc] sm:$0xf0]  ;;  %v538_v14 = vld [vmem:[#allocation2 + $0xc4] sm:$0xf] }
   0x9   :  { %v485_v15 = vld [vmem:[#allocation2 + $0xd0] sm:$0xf0]  ;;  %254 = vmatpush.bf16.msra.mxu1 %v504_v7  ;;  %v484_v16 = vor.u32 %v540_v13, %v483_v11  ;;  %v491_v18 = vld [vmem:[#allocation2 + $0xc8] sm:$0xf]  ;;  %v541_v19 = vld [vmem:[#allocation2 + $0xd4] sm:$0xf0] }
   0xa   :  { %268 = vmatpush.bf16.msra.mxu2 %v508_v8  ;;  %v488_v17 = vor.u32 %v538_v14, %v485_v15  ;;  %v539_v20 = vld [vmem:[#allocation2 + $0xcc] sm:$0xf]  ;;  %282 = vmatpush.bf16.msra.mxu3 %v512_v12  ;;  %v492_v21 = vor.u32 %v541_v19, %v491_v18  ;;  %v493_v22 = vld [vmem:[#allocation2 + $0xd8] sm:$0xf0]  ;;  %v467_v23 = vld [vmem:[#allocation2 + $0xa0] sm:$0xf] }
   0xb   :  { %v536_v24 = vld [vmem:[#allocation2 + $0xac] sm:$0xf0]  ;;  %v496_v25 = vor.u32 %v539_v20, %v493_v22  ;;  %v534_v26 = vld [vmem:[#allocation2 + $0xa4] sm:$0xf]  ;;  %v469_v27 = vld [vmem:[#allocation2 + $0xb0] sm:$0xf0] }
   0xc   :  { %v475_v28 = vld [vmem:[#allocation2 + $0xa8] sm:$0xf]  ;;  %241 = vmatpush.bf16.msra.mxu0 %v484_v16  ;;  %v468_v29 = vor.u32 %v536_v24, %v467_v23  ;;  %v537_v30 = vld [vmem:[#allocation2 + $0xb4] sm:$0xf0]  ;;  %v535_v31 = vld [vmem:[#allocation2 + $0xac] sm:$0xf]  ;;  %v472_v33 = vor.u32 %v534_v26, %v469_v27 }
   0xd   :  { %v477_v32 = vld [vmem:[#allocation2 + $0xb8] sm:$0xf0]  ;;  %255 = vmatpush.bf16.msra.mxu1 %v488_v17  ;;  %v476_v34 = vor.u32 %v537_v30, %v475_v28  ;;  %v451_v35 = vld [vmem:[#allocation2 + $0x80] sm:$0xf]  ;;  %v532_v36 = vld [vmem:[#allocation2 + $0x8c] sm:$0xf0] }
   0xe   :  { %269 = vmatpush.bf16.msra.mxu2 %v492_v21  ;;  %v530_v37 = vld [vmem:[#allocation2 + $0x84] sm:$0xf]  ;;  %283 = vmatpush.bf16.msra.mxu3 %v496_v25  ;;  %v480_v38 = vor.u32 %v535_v31, %v477_v32  ;;  %v453_v39 = vld [vmem:[#allocation2 + $0x90] sm:$0xf0]  ;;  %v459_v40 = vld [vmem:[#allocation2 + $0x88] sm:$0xf]  ;;  %v452_v44 = vor.u32 %v532_v36, %v451_v35 }
   0xf   :  { %v533_v41 = vld [vmem:[#allocation2 + $0x94] sm:$0xf0]  ;;  %v531_v42 = vld [vmem:[#allocation2 + $0x8c] sm:$0xf]  ;;  %v461_v43 = vld [vmem:[#allocation2 + $0x98] sm:$0xf0]  ;;  %v456_v45 = vor.u32 %v530_v37, %v453_v39 }
  0x10   :  { %242 = vmatpush.bf16.msra.mxu0 %v468_v29  ;;  %v460_v46 = vor.u32 %v533_v41, %v459_v40  ;;  %v435_v47 = vld [vmem:[#allocation2 + $0x60] sm:$0xf]  ;;  %v528_v48 = vld [vmem:[#allocation2 + $0x6c] sm:$0xf0]  ;;  %v526_v49 = vld [vmem:[#allocation2 + $0x64] sm:$0xf]  ;;  %v464_v50 = vor.u32 %v531_v42, %v461_v43 }
  0x11   :  { %256 = vmatpush.bf16.msra.mxu1 %v472_v33  ;;  %v437_v51 = vld [vmem:[#allocation2 + $0x70] sm:$0xf0]  ;;  %v443_v52 = vld [vmem:[#allocation2 + $0x68] sm:$0xf]  ;;  %v529_v53 = vld [vmem:[#allocation2 + $0x74] sm:$0xf0]  ;;  %v436_v56 = vor.u32 %v528_v48, %v435_v47 }
  0x12   :  { %270 = vmatpush.bf16.msra.mxu2 %v476_v34  ;;  %284 = vmatpush.bf16.msra.mxu3 %v480_v38  ;;  %v527_v54 = vld [vmem:[#allocation2 + $0x6c] sm:$0xf]  ;;  %v445_v55 = vld [vmem:[#allocation2 + $0x78] sm:$0xf0]  ;;  %v440_v57 = vor.u32 %v526_v49, %v437_v51  ;;  %v444_v58 = vor.u32 %v529_v53, %v443_v52  ;;  %v419_v59 = vld [vmem:[#allocation2 + $0x40] sm:$0xf] }
  0x13   :  { %v524_v60 = vld [vmem:[#allocation2 + $0x4c] sm:$0xf0]  ;;  %v522_v61 = vld [vmem:[#allocation2 + $0x44] sm:$0xf]  ;;  %v448_v62 = vor.u32 %v527_v54, %v445_v55  ;;  %v421_v63 = vld [vmem:[#allocation2 + $0x50] sm:$0xf0] }
  0x14   :  { %243 = vmatpush.bf16.msra.mxu0 %v452_v44  ;;  %v427_v0 = vld [vmem:[#allocation2 + $0x48] sm:$0xf]  ;;  %v525_v1 = vld [vmem:[#allocation2 + $0x54] sm:$0xf0]  ;;  %v523_v2 = vld [vmem:[#allocation2 + $0x4c] sm:$0xf]  ;;  %v420_v4 = vor.u32 %v524_v60, %v419_v59  ;;  %v424_v5 = vor.u32 %v522_v61, %v421_v63 }
  0x15   :  { %257 = vmatpush.bf16.msra.mxu1 %v456_v45  ;;  %v429_v3 = vld [vmem:[#allocation2 + $0x58] sm:$0xf0]  ;;  %v428_v6 = vor.u32 %v525_v1, %v427_v0  ;;  %v403_v7 = vld [vmem:[#allocation2 + $0x20] sm:$0xf]  ;;  %v520_v8 = vld [vmem:[#allocation2 + $0x2c] sm:$0xf0] }
  0x16   :  { %271 = vmatpush.bf16.msra.mxu2 %v460_v46  ;;  %285 = vmatpush.bf16.msra.mxu3 %v464_v50  ;;  %v518_v9 = vld [vmem:[#allocation2 + $0x24] sm:$0xf]  ;;  %v432_v10 = vor.u32 %v523_v2, %v429_v3  ;;  %v405_v11 = vld [vmem:[#allocation2 + $0x30] sm:$0xf0]  ;;  %v411_v12 = vld [vmem:[#allocation2 + $0x28] sm:$0xf]  ;;  %v404_v16 = vor.u32 %v520_v8, %v403_v7 }
  0x17   :  { %v521_v13 = vld [vmem:[#allocation2 + $0x34] sm:$0xf0]  ;;  %v519_v14 = vld [vmem:[#allocation2 + $0x2c] sm:$0xf]  ;;  %v413_v15 = vld [vmem:[#allocation2 + $0x38] sm:$0xf0]  ;;  %v408_v17 = vor.u32 %v518_v9, %v405_v11 }
  0x18   :  { %244 = vmatpush.bf16.msra.mxu0 %v436_v56  ;;  %v412_v18 = vor.u32 %v521_v13, %v411_v12  ;;  %v387_v19 = vld [vmem:[#allocation2] sm:$0xf]  ;;  %v516_v20 = vld [vmem:[#allocation2 + $0xc] sm:$0xf0]  ;;  %v514_v21 = vld [vmem:[#allocation2 + $0x4] sm:$0xf]  ;;  %v416_v22 = vor.u32 %v519_v14, %v413_v15 }
  0x19   :  { %258 = vmatpush.bf16.msra.mxu1 %v440_v57  ;;  %v389_v23 = vld [vmem:[#allocation2 + $0x10] sm:$0xf0]  ;;  %v395_v24 = vld [vmem:[#allocation2 + $0x8] sm:$0xf]  ;;  %v517_v25 = vld [vmem:[#allocation2 + $0x14] sm:$0xf0]  ;;  %v388_v28 = vor.u32 %v516_v20, %v387_v19 }
  0x1a   :  { %272 = vmatpush.bf16.msra.mxu2 %v444_v58  ;;  %286 = vmatpush.bf16.msra.mxu3 %v448_v62  ;;  %v515_v26 = vld [vmem:[#allocation2 + $0xc] sm:$0xf]  ;;  %v397_v27 = vld [vmem:[#allocation2 + $0x18] sm:$0xf0]  ;;  %v392_v29 = vor.u32 %v514_v21, %v389_v23  ;;  %v396_v30 = vor.u32 %v517_v25, %v395_v24  ;;  %v513_v32 = vld [vmem:[%s649_s0] sm:$0xff] }
  0x1b   :  { %v400_v31 = vor.u32 %v515_v26, %v397_v27  ;;  %v64_v33 = vld [vmem:[%s651_s2] sm:$0xf] }
  0x1c   :  { %245 = vmatpush.bf16.msra.mxu0 %v420_v4  ;;  %v66_v34 = vperm.slane %v64_v33, 0  ;;  %v67_v35 = vperm.slane %v64_v33, 1  ;;  %v68_v42 = vperm.slane %v64_v33, 2  ;;  %v69_v44 = vperm.slane %v64_v33, 3 }
  0x1d   :  { %259 = vmatpush.bf16.msra.mxu1 %v424_v5 }
  0x1e   :  { %273 = vmatpush.bf16.msra.mxu2 %v428_v6  ;;  %287 = vmatpush.bf16.msra.mxu3 %v432_v10 }
  0x20   :  { %246 = vmatpush.bf16.msra.mxu0 %v404_v16 }
  0x21   :  { %260 = vmatpush.bf16.msra.mxu1 %v408_v17 }
  0x22   :  { %274 = vmatpush.bf16.msra.mxu2 %v412_v18  ;;  %288 = vmatpush.bf16.msra.mxu3 %v416_v22 }
  0x24   :  { %247 = vmatpush.bf16.msra.mxu0 %v388_v28 }
  0x25   :  { %261 = vmatpush.bf16.msra.mxu1 %v392_v29 }
  0x26   :  { %275 = vmatpush.bf16.msra.mxu2 %v396_v30  ;;  %289 = vmatpush.bf16.msra.mxu3 %v400_v31 }
  0x27   :  { %248 = vmatmul.bf16.vlgmr.msra.gmra.mxu0 %v513_v32 }
  0x28   :  { %262 = vmatmul.bf16.vlgmr.msra.gmra.mxu1 %v513_v32 }
  0x29   :  { %276 = vmatmul.bf16.vlgmr.msra.gmra.mxu2 %v513_v32  ;;  %290 = vmatmul.bf16.vlgmr.msra.gmra.mxu3 %v513_v32 }
  0xa4   :  { %v249_v36 = vpop.f32.mrf.mxu0 }
  0xa5   :  { %v250_v37 = vadd.f32 %v249_v36, %v66_v34  ;;  %v263_v38 = vpop.f32.mrf.mxu1 }
  0xa6   :  { %v264_v39 = vadd.f32 %v263_v38, %v67_v35 }
  0xa7   :  { %v304_v40 = vmul.f32 0.044715, %v250_v37  ;;  %v296_v14 = vmul.f32 0.5, %v250_v37 }
  0xa8   :  { %v305_v41 = vmul.f32 0.044715, %v264_v39  ;;  %v297_v19 = vmul.f32 0.5, %v264_v39 }
  0xa9   :  { %v312_v43 = vmul.f32 %v304_v40, %v250_v37 }
  0xaa   :  { %v313_v45 = vmul.f32 %v305_v41, %v264_v39 }
  0xab   :  { %v320_v46 = vmul.f32 %v312_v43, %v250_v37 }
  0xac   :  { %v277_v47 = vpop.f32.mrf.mxu2  ;;  %v321_v48 = vmul.f32 %v313_v45, %v264_v39  ;;  %v291_v50 = vpop.f32.mrf.mxu3 }
  0xad   :  { %v278_v49 = vadd.f32 %v277_v47, %v68_v42  ;;  %v251_v51 = vpop.f32.mrf.mxu0  ;;  %v328_v52 = vadd.f32 %v320_v46, %v250_v37  ;;  %v292_v53 = vadd.f32 %v291_v50, %v69_v44  ;;  %v265_v55 = vpop.f32.mrf.mxu1 }
  0xae   :  { %v623_v54 = vadd.f32 %v251_v51, %v66_v34  ;;  %v329_v56 = vadd.f32 %v321_v48, %v264_v39  ;;  %v625_v58 = vadd.f32 %v265_v55, %v67_v35 }
  0xaf   :  { %v306_v57 = vmul.f32 0.044715, %v278_v49  ;;  %v336_v59 = vmul.f32 0.7978846, %v328_v52  ;;  %v307_v60 = vmul.f32 0.044715, %v292_v53 }
  0xb0   :  { %v337_v61 = vmul.f32 0.7978846, %v329_v56  ;;  %v308_v63 = vmul.f32 0.044715, %v623_v54  ;;  %v309_v1 = vmul.f32 0.044715, %v625_v58 }
  0xb1   :  { %v314_v62 = vmul.f32 %v306_v57, %v278_v49  ;;  %549 = vtanh.f32 %v336_v59  ;;  %v315_v0 = vmul.f32 %v307_v60, %v292_v53  ;;  %v298_v40 = vmul.f32 0.5, %v278_v49 }
  0xb2   :  { %551 = vtanh.f32 %v337_v61  ;;  %v316_v3 = vmul.f32 %v308_v63, %v623_v54  ;;  %v317_v5 = vmul.f32 %v309_v1, %v625_v58  ;;  %v300_v48 = vmul.f32 0.5, %v623_v54 }
  0xb3   :  { %v322_v2 = vmul.f32 %v314_v62, %v278_v49  ;;  %v323_v4 = vmul.f32 %v315_v0, %v292_v53  ;;  %v301_v52 = vmul.f32 0.5, %v625_v58 }
  0xb4   :  { %v279_v6 = vpop.f32.mrf.mxu2  ;;  %v324_v8 = vmul.f32 %v316_v3, %v623_v54  ;;  %v293_v10 = vpop.f32.mrf.mxu3  ;;  %v325_v12 = vmul.f32 %v317_v5, %v625_v58 }
  0xb5   :  { %v330_v7 = vadd.f32 %v322_v2, %v278_v49  ;;  %v280_v9 = vadd.f32 %v279_v6, %v68_v42  ;;  %v331_v11 = vadd.f32 %v323_v4, %v292_v53  ;;  %v294_v13 = vadd.f32 %v293_v10, %v69_v44 }
  0xb6   :  { %v332_v16 = vadd.f32 %v324_v8, %v623_v54  ;;  %v333_v21 = vadd.f32 %v325_v12, %v625_v58  ;;  %v299_v44 = vmul.f32 0.5, %v292_v53 }
  0xb7   :  { %v338_v15 = vmul.f32 0.7978846, %v330_v7  ;;  %v310_v17 = vmul.f32 0.044715, %v280_v9  ;;  %v550_v18 = vpop.eup %549  ;;  %v339_v20 = vmul.f32 0.7978846, %v331_v11 }
  0xb8   :  { %v311_v22 = vmul.f32 0.044715, %v294_v13  ;;  %v552_v23 = vpop.eup %551  ;;  %v352_v24 = vadd.f32 1.0, %v550_v18  ;;  %v340_v25 = vmul.f32 0.7978846, %v332_v16  ;;  %v302_v61 = vmul.f32 0.5, %v280_v9 }
  0xb9   :  { %553 = vtanh.f32 %v338_v15  ;;  %v318_v26 = vmul.f32 %v310_v17, %v280_v9  ;;  %v353_v27 = vadd.f32 1.0, %v552_v23  ;;  %v341_v28 = vmul.f32 0.7978846, %v333_v21 }
  0xba   :  { %555 = vtanh.f32 %v339_v20  ;;  %v319_v29 = vmul.f32 %v311_v22, %v294_v13  ;;  %v360_v30 = vmul.f32 %v352_v24, %v296_v14  ;;  %v303_v54 = vmul.f32 0.5, %v294_v13 }
  0xbb   :  { %557 = vtanh.f32 %v340_v25  ;;  %v326_v31 = vmul.f32 %v318_v26, %v280_v9  ;;  %v361_v32 = vmul.f32 %v353_v27, %v297_v19 }
  0xbc   :  { %559 = vtanh.f32 %v341_v28  ;;  %v327_v33 = vmul.f32 %v319_v29, %v294_v13 }
  0xbd   :  { %v334_v34 = vadd.f32 %v326_v31, %v280_v9  ;;  %v368_v35 = vpack.c.bf16 %v361_v32, %v360_v30 }
  0xbe   :  { %v335_v36 = vadd.f32 %v327_v33, %v294_v13 }
  0xbf   :  { %v554_v37 = vpop.eup %553  ;;  %v342_v38 = vmul.f32 0.7978846, %v334_v34  ;;  %372 = vst [vmem:[%s652_s3] sm:$0xff] %v368_v35 }
  0xc0   :  { %v556_v39 = vpop.eup %555  ;;  %v354_v41 = vadd.f32 1.0, %v554_v37  ;;  %v343_v42 = vmul.f32 0.7978846, %v335_v36 }
  0xc1   :  { %v558_v43 = vpop.eup %557  ;;  %v355_v45 = vadd.f32 1.0, %v556_v39  ;;  %561 = vtanh.f32 %v342_v38 }
  0xc2   :  { %v560_v46 = vpop.eup %559  ;;  %v362_v47 = vmul.f32 %v354_v41, %v298_v40  ;;  %v356_v50 = vadd.f32 1.0, %v558_v43  ;;  %563 = vtanh.f32 %v343_v42 }
  0xc3   :  { %v363_v51 = vmul.f32 %v355_v45, %v299_v44  ;;  %v357_v55 = vadd.f32 1.0, %v560_v46 }
  0xc4   :  { %v364_v56 = vmul.f32 %v356_v50, %v300_v48 }
  0xc5   :  { %v369_v57 = vpack.c.bf16 %v363_v51, %v362_v47  ;;  %v365_v59 = vmul.f32 %v357_v55, %v301_v52 }
  0xc7   :  { %v562_v49 = vpop.eup %561  ;;  %373 = vst [vmem:[%s652_s3 + $0x8] sm:$0xff] %v369_v57  ;;  %v370_v53 = vpack.c.bf16 %v365_v59, %v364_v56 }
  0xc8   :  { %v564_v60 = vpop.eup %563  ;;  %v358_v62 = vadd.f32 1.0, %v562_v49 }
  0xc9   :  { %374 = vst [vmem:[%s652_s3 + $0x10] sm:$0xff] %v370_v53  ;;  %v359_v63 = vadd.f32 1.0, %v564_v60 }
  0xca   :  { %v366_v58 = vmul.f32 %v358_v62, %v302_v61 }
  0xcb   :  { %v367_v0 = vmul.f32 %v359_v63, %v303_v54 }
  0xcd   :  { %v371_v1 = vpack.c.bf16 %v367_v0, %v366_v58 }
  0xcf   :  { %375 = vst [vmem:[%s652_s3 + $0x18] sm:$0xff] %v371_v1 }
  0xd0   :  { %380 = vsyncpa [#allocation3], 1 }

// kernel: bert_for_pretraining.25
= control target key start
LH: loop header
LB: loop body
LE: loop exit
PB: predicated region body
PF: predicated region fallthrough
CT: control target
= control target key end

     0   :  { %v259_v32 = vmov 128.0   ;;  %s329_s1 = inlined_call_operand.vmem [shape: bf16[128,128], index: 1, kind: input, shape index: {}]   ;;  %s330_s2 = inlined_call_operand.vmem [shape: f32[1,128], index: 2, kind: input, shape index: {}]   ;;  %s331_s0 = inlined_call_operand.vmem [shape: bf16[16,128], index: 0, kind: input, shape index: {}]   ;;  %s332_s3 = inlined_call_operand.vmem [shape: f32[1,128], index: 3, kind: input, shape index: {}]   ;;  %s333_s4 = inlined_call_operand.vmem [shape: f32[1,128], index: 4, kind: input, shape index: {}]   ;;  %s334_s5 = inlined_call_operand.vmem [shape: bf16[16,128], index: 5, kind: output, shape index: {}]  }
   0x1   :  { %v239_v0 = vld [vmem:[%s329_s1 + $0x38] sm:$0xff]  ;;  %v238_v1 = vld [vmem:[%s329_s1 + $0x30] sm:$0xff]  ;;  %v237_v2 = vld [vmem:[%s329_s1 + $0x28] sm:$0xff] }
   0x2   :  { %96 = vmatpush.bf16.msra.mxu0 %v239_v0  ;;  %v236_v3 = vld [vmem:[%s329_s1 + $0x20] sm:$0xff]  ;;  %v235_v4 = vld [vmem:[%s329_s1 + $0x18] sm:$0xff]  ;;  %v234_v5 = vld [vmem:[%s329_s1 + $0x10] sm:$0xff] }
   0x3   :  { %v233_v6 = vld [vmem:[%s329_s1 + $0x8] sm:$0xff]  ;;  %v232_v7 = vld [vmem:[%s329_s1] sm:$0xff] }
   0x4   :  { %v231_v8 = vld [vmem:[%s331_s0] sm:$0xff] }
   0x5   :  { %v246_v9 = vld [vmem:[%s330_s2] ss:$0 sm:$0xff] }
   0x6   :  { %97 = vmatpush.bf16.msra.mxu0 %v238_v1  ;;  %v247_v1 = vld [vmem:[%s332_s3] ss:$0 sm:$0xff] }
   0xa   :  { %98 = vmatpush.bf16.msra.mxu0 %v237_v2 }
   0xe   :  { %99 = vmatpush.bf16.msra.mxu0 %v236_v3 }
  0x12   :  { %100 = vmatpush.bf16.msra.mxu0 %v235_v4 }
  0x16   :  { %101 = vmatpush.bf16.msra.mxu0 %v234_v5  ;;  %v248_v5 = vld [vmem:[%s333_s4] ss:$0 sm:$0xff] }
  0x1a   :  { %102 = vmatpush.bf16.msra.mxu0 %v233_v6 }
  0x1e   :  { %103 = vmatpush.bf16.msra.mxu0 %v232_v7 }
  0x21   :  { %104 = vmatmul.bf16.vlgmr.msra.gmra.mxu0 %v231_v8 }
  0x9e   :  { %v105_v10 = vpop.f32.mrf.mxu0 }
  0x9f   :  { %v106_v11 = vadd.f32 %v246_v9, %v105_v10 }
  0xa1   :  { %v112_v12 = vmul.f32 0.044715, %v106_v11  ;;  %v110_v25 = vmul.f32 0.5, %v106_v11 }
  0xa3   :  { %v114_v13 = vmul.f32 %v112_v12, %v106_v11 }
  0xa5   :  { %v116_v14 = vmul.f32 %v114_v13, %v106_v11 }
  0xa6   :  { %v107_v15 = vpop.f32.mrf.mxu0 }
  0xa7   :  { %v108_v16 = vadd.f32 %v246_v9, %v107_v15  ;;  %v118_v17 = vadd.f32 %v116_v14, %v106_v11 }
  0xa9   :  { %v120_v18 = vmul.f32 0.7978846, %v118_v17  ;;  %v113_v19 = vmul.f32 0.044715, %v108_v16  ;;  %v111_v29 = vmul.f32 0.5, %v108_v16 }
  0xab   :  { %249 = vtanh.f32 %v120_v18  ;;  %v115_v20 = vmul.f32 %v113_v19, %v108_v16 }
  0xad   :  { %v117_v21 = vmul.f32 %v115_v20, %v108_v16 }
  0xaf   :  { %v119_v22 = vadd.f32 %v117_v21, %v108_v16 }
  0xb1   :  { %v250_v23 = vpop.eup %249  ;;  %v121_v24 = vmul.f32 0.7978846, %v119_v22 }
  0xb2   :  { %v124_v26 = vadd.f32 1.0, %v250_v23 }
  0xb3   :  { %251 = vtanh.f32 %v121_v24 }
  0xb4   :  { %v126_v27 = vmul.f32 %v124_v26, %v110_v25  ;;  %253 = vrcp.f32 %v259_v32 }
  0xb6   :  { %128 = vadd.xlane.f32.xlu0 %v126_v27 }
  0xb9   :  { %v252_v28 = vpop.eup %251 }
  0xba   :  { %v125_v30 = vadd.f32 1.0, %v252_v28  ;;  %v254_v33 = vpop.eup %253 }
  0xbb   :  { %v133_v34 = vmul.f32 128.0, %v254_v33  ;;  %vm137_vm0 = vweird.f32 %v254_v33 }
  0xbc   :  { %v127_v31 = vmul.f32 %v125_v30, %v111_v29 }
  0xbd   :  { %v134_v35 = vsub.f32 1.0, %v133_v34 }
  0xbe   :  { %130 = vadd.xlane.f32.xlu0 %v127_v31 }
  0xbf   :  { %v135_v36 = vmul.f32 %v254_v33, %v134_v35 }
  0xc1   :  { %v136_v37 = vadd.f32 %v254_v33, %v135_v36 }
  0xc3   :  { %v138_v38 = vsel %vm137_vm0, %v254_v33, %v136_v37 }
 0x129   :  { %v129_v39 = vpop.xlane.xlu0 %128 }
 0x12a   :  { %v139_v40 = vmul.f32 %v138_v38, %v129_v39 }
 0x12c   :  { %v141_v41 = vsub.f32 %v126_v27, %v139_v40 }
 0x12e   :  { %v143_v42 = vmul.f32 %v141_v41, %v141_v41 }
 0x130   :  { %145 = vadd.xlane.f32.xlu1 %v143_v42 }
 0x131   :  { %v131_v43 = vpop.xlane.xlu0 %130 }
 0x132   :  { %v140_v44 = vmul.f32 %v138_v38, %v131_v43 }
 0x134   :  { %v142_v45 = vsub.f32 %v127_v31, %v140_v44 }
 0x136   :  { %v144_v46 = vmul.f32 %v142_v45, %v142_v45 }
 0x138   :  { %147 = vadd.xlane.f32.xlu1 %v144_v46 }
 0x1a3   :  { %v146_v47 = vpop.xlane.xlu1 %145 }
 0x1a4   :  { %v149_v48 = vmul.f32 %v146_v47, %v138_v38 }
 0x1a6   :  { %v151_v49 = vadd.f32 1e-05, %v149_v48 }
 0x1a8   :  { %255 = vrsqrt.f32 %v151_v49  ;;  %vm159_vm2 = vweird.f32 %v151_v49 }
 0x1ab   :  { %v148_v50 = vpop.xlane.xlu1 %147 }
 0x1ac   :  { %v150_v51 = vmul.f32 %v148_v50, %v138_v38 }
 0x1ae   :  { %v256_v52 = vpop.eup %255  ;;  %v152_v53 = vadd.f32 1e-05, %v150_v51 }
 0x1af   :  { %v154_v54 = vmul.f32 %v256_v52, %v151_v49  ;;  %vm160_vm1 = vweird.f32 %v256_v52 }
 0x1b0   :  { %257 = vrsqrt.f32 %v152_v53  ;;  %vm161_vm3 = vmor %vm159_vm2, %vm160_vm1  ;;  %vm169_vm5 = vweird.f32 %v152_v53 }
 0x1b1   :  { %v155_v55 = vmul.f32 %v256_v52, %v154_v54 }
 0x1b3   :  { %v156_v56 = vmul.f32 0.5, %v155_v55 }
 0x1b5   :  { %v157_v57 = vsub.f32 1.5, %v156_v56 }
 0x1b6   :  { %v258_v58 = vpop.eup %257 }
 0x1b7   :  { %v158_v59 = vmul.f32 %v256_v52, %v157_v57  ;;  %v164_v60 = vmul.f32 %v258_v58, %v152_v53  ;;  %vm170_vm4 = vweird.f32 %v258_v58 }
 0x1b8   :  { %vm171_vm6 = vmor %vm169_vm5, %vm170_vm4 }
 0x1b9   :  { %v165_v61 = vmul.f32 %v258_v58, %v164_v60  ;;  %v162_v62 = vsel %vm161_vm3, %v256_v52, %v158_v59 }
 0x1ba   :  { %v173_v2 = vmul.f32 %v162_v62, %v141_v41 }
 0x1bb   :  { %v166_v63 = vmul.f32 0.5, %v165_v61 }
 0x1bc   :  { %v179_v6 = vmul.f32 %v247_v1, %v173_v2 }
 0x1bd   :  { %v167_v0 = vsub.f32 1.5, %v166_v63 }
 0x1be   :  { %v185_v9 = vadd.f32 %v248_v5, %v179_v6 }
 0x1bf   :  { %v168_v3 = vmul.f32 %v258_v58, %v167_v0 }
 0x1c1   :  { %v172_v4 = vsel %vm171_vm6, %v258_v58, %v168_v3 }
 0x1c2   :  { %v174_v7 = vmul.f32 %v172_v4, %v142_v45 }
 0x1c4   :  { %v180_v8 = vmul.f32 %v247_v1, %v174_v7 }
 0x1c6   :  { %v186_v10 = vadd.f32 %v248_v5, %v180_v8 }
 0x1c8   :  { %v243_v11 = vpack.c.bf16 %v186_v10, %v185_v9 }
 0x1ca   :  { %244 = vst [vmem:[%s334_s5] sm:$0xff] %v243_v11  }

// kernel: bert_for_pretraining.26
= control target key start
LH: loop header
LB: loop body
LE: loop exit
PB: predicated region body
PF: predicated region fallthrough
CT: control target
= control target key end

     0   :  { %8 = vsyncpa [#allocation3], 0  ;;  %s585_s0 = inlined_call_operand.vmem [shape: bf16[16,128], index: 0, kind: input, shape index: {}]   ;;  %s586_s1 = inlined_call_operand.hbm [shape: bf16[128,512], index: 1, kind: input, shape index: {}]   ;;  %s587_s2 = inlined_call_operand.vmem [shape: f32[1,512], index: 2, kind: input, shape index: {}]   ;;  %s588_s3 = inlined_call_operand.hbm [shape: f32[16,512], index: 3, kind: output, shape index: {}]  }
   0x1   :  { %9 = vsyncpa [#allocation4], 0  ;;  %s16_s14 = sshll.u32 %s586_s1, 4  ;;  %s547_s15 = smov [#allocation2]   ;;  %s17_s14 = int_to_ptr.hbm [resolvable:$true] %s16_s14 }
   0x2   :  { %s18_s16 = sshll.u32 %s547_s15, 4  ;;  %s548_s17 = smov 256   ;;  %s19_s16 = int_to_ptr.vmem [resolvable:$true] %s18_s16 }
   0x3   :  { %s549_s18 = smov 16  }
   0x4   :  { %24 = dma.hbm_to_vmem [thread:$0]  %s17_s14, 4096, %s19_s16, [#allocation3], %s548_s17, %s548_s17, %s549_s18  }
   0x5   :  { %543 = dma.done.wait [#allocation3], 4096  }
   0x6   :  { %544 = vsyncadd [#allocation3], 4294963200  ;;  %v442_v0 = vld [vmem:[#allocation2 + $0xe0] sm:$0xf]  ;;  %v487_v1 = vld [vmem:[#allocation2 + $0xec] sm:$0xf0] }
   0x7   :  { %v485_v2 = vld [vmem:[#allocation2 + $0xe4] sm:$0xf]  ;;  %v443_v3 = vor.u32 %v487_v1, %v442_v0  ;;  %v444_v4 = vld [vmem:[#allocation2 + $0xf0] sm:$0xf0]  ;;  %v450_v5 = vld [vmem:[#allocation2 + $0xe8] sm:$0xf] }
   0x8   :  { %v488_v6 = vld [vmem:[#allocation2 + $0xf4] sm:$0xf0]  ;;  %v447_v7 = vor.u32 %v485_v2, %v444_v4  ;;  %v486_v9 = vld [vmem:[#allocation2 + $0xec] sm:$0xf]  ;;  %v452_v10 = vld [vmem:[#allocation2 + $0xf8] sm:$0xf0] }
   0x9   :  { %v451_v8 = vor.u32 %v488_v6, %v450_v5  ;;  %v426_v11 = vld [vmem:[#allocation2 + $0xc0] sm:$0xf]  ;;  %241 = vmatpush.bf16.msra.mxu0 %v443_v3  ;;  %v455_v12 = vor.u32 %v486_v9, %v452_v10  ;;  %v483_v13 = vld [vmem:[#allocation2 + $0xcc] sm:$0xf0]  ;;  %v481_v14 = vld [vmem:[#allocation2 + $0xc4] sm:$0xf] }
   0xa   :  { %v428_v15 = vld [vmem:[#allocation2 + $0xd0] sm:$0xf0]  ;;  %255 = vmatpush.bf16.msra.mxu1 %v447_v7  ;;  %v427_v16 = vor.u32 %v483_v13, %v426_v11  ;;  %v434_v18 = vld [vmem:[#allocation2 + $0xc8] sm:$0xf]  ;;  %v484_v19 = vld [vmem:[#allocation2 + $0xd4] sm:$0xf0] }
   0xb   :  { %269 = vmatpush.bf16.msra.mxu2 %v451_v8  ;;  %v431_v17 = vor.u32 %v481_v14, %v428_v15  ;;  %v482_v20 = vld [vmem:[#allocation2 + $0xcc] sm:$0xf]  ;;  %283 = vmatpush.bf16.msra.mxu3 %v455_v12  ;;  %v435_v21 = vor.u32 %v484_v19, %v434_v18  ;;  %v436_v22 = vld [vmem:[#allocation2 + $0xd8] sm:$0xf0]  ;;  %v410_v23 = vld [vmem:[#allocation2 + $0xa0] sm:$0xf] }
   0xc   :  { %v479_v24 = vld [vmem:[#allocation2 + $0xac] sm:$0xf0]  ;;  %v439_v25 = vor.u32 %v482_v20, %v436_v22  ;;  %v477_v26 = vld [vmem:[#allocation2 + $0xa4] sm:$0xf]  ;;  %v412_v27 = vld [vmem:[#allocation2 + $0xb0] sm:$0xf0] }
   0xd   :  { %v418_v28 = vld [vmem:[#allocation2 + $0xa8] sm:$0xf]  ;;  %242 = vmatpush.bf16.msra.mxu0 %v427_v16  ;;  %v411_v29 = vor.u32 %v479_v24, %v410_v23  ;;  %v480_v30 = vld [vmem:[#allocation2 + $0xb4] sm:$0xf0]  ;;  %v478_v31 = vld [vmem:[#allocation2 + $0xac] sm:$0xf]  ;;  %v415_v33 = vor.u32 %v477_v26, %v412_v27 }
   0xe   :  { %v420_v32 = vld [vmem:[#allocation2 + $0xb8] sm:$0xf0]  ;;  %256 = vmatpush.bf16.msra.mxu1 %v431_v17  ;;  %v419_v34 = vor.u32 %v480_v30, %v418_v28  ;;  %v394_v35 = vld [vmem:[#allocation2 + $0x80] sm:$0xf]  ;;  %v475_v36 = vld [vmem:[#allocation2 + $0x8c] sm:$0xf0] }
   0xf   :  { %270 = vmatpush.bf16.msra.mxu2 %v435_v21  ;;  %v473_v37 = vld [vmem:[#allocation2 + $0x84] sm:$0xf]  ;;  %284 = vmatpush.bf16.msra.mxu3 %v439_v25  ;;  %v423_v38 = vor.u32 %v478_v31, %v420_v32  ;;  %v396_v39 = vld [vmem:[#allocation2 + $0x90] sm:$0xf0]  ;;  %v402_v40 = vld [vmem:[#allocation2 + $0x88] sm:$0xf]  ;;  %v395_v44 = vor.u32 %v475_v36, %v394_v35 }
  0x10   :  { %v476_v41 = vld [vmem:[#allocation2 + $0x94] sm:$0xf0]  ;;  %v474_v42 = vld [vmem:[#allocation2 + $0x8c] sm:$0xf]  ;;  %v404_v43 = vld [vmem:[#allocation2 + $0x98] sm:$0xf0]  ;;  %v399_v45 = vor.u32 %v473_v37, %v396_v39 }
  0x11   :  { %243 = vmatpush.bf16.msra.mxu0 %v411_v29  ;;  %v403_v46 = vor.u32 %v476_v41, %v402_v40  ;;  %v378_v47 = vld [vmem:[#allocation2 + $0x60] sm:$0xf]  ;;  %v471_v48 = vld [vmem:[#allocation2 + $0x6c] sm:$0xf0]  ;;  %v469_v49 = vld [vmem:[#allocation2 + $0x64] sm:$0xf]  ;;  %v407_v50 = vor.u32 %v474_v42, %v404_v43 }
  0x12   :  { %257 = vmatpush.bf16.msra.mxu1 %v415_v33  ;;  %v380_v51 = vld [vmem:[#allocation2 + $0x70] sm:$0xf0]  ;;  %v386_v52 = vld [vmem:[#allocation2 + $0x68] sm:$0xf]  ;;  %v472_v53 = vld [vmem:[#allocation2 + $0x74] sm:$0xf0]  ;;  %v379_v56 = vor.u32 %v471_v48, %v378_v47 }
  0x13   :  { %271 = vmatpush.bf16.msra.mxu2 %v419_v34  ;;  %285 = vmatpush.bf16.msra.mxu3 %v423_v38  ;;  %v470_v54 = vld [vmem:[#allocation2 + $0x6c] sm:$0xf]  ;;  %v388_v55 = vld [vmem:[#allocation2 + $0x78] sm:$0xf0]  ;;  %v383_v57 = vor.u32 %v469_v49, %v380_v51  ;;  %v387_v58 = vor.u32 %v472_v53, %v386_v52  ;;  %v362_v59 = vld [vmem:[#allocation2 + $0x40] sm:$0xf] }
  0x14   :  { %v467_v60 = vld [vmem:[#allocation2 + $0x4c] sm:$0xf0]  ;;  %v465_v61 = vld [vmem:[#allocation2 + $0x44] sm:$0xf]  ;;  %v391_v62 = vor.u32 %v470_v54, %v388_v55  ;;  %v364_v63 = vld [vmem:[#allocation2 + $0x50] sm:$0xf0] }
  0x15   :  { %244 = vmatpush.bf16.msra.mxu0 %v395_v44  ;;  %v370_v0 = vld [vmem:[#allocation2 + $0x48] sm:$0xf]  ;;  %v468_v1 = vld [vmem:[#allocation2 + $0x54] sm:$0xf0]  ;;  %v466_v2 = vld [vmem:[#allocation2 + $0x4c] sm:$0xf]  ;;  %v363_v4 = vor.u32 %v467_v60, %v362_v59  ;;  %v367_v5 = vor.u32 %v465_v61, %v364_v63 }
  0x16   :  { %258 = vmatpush.bf16.msra.mxu1 %v399_v45  ;;  %v372_v3 = vld [vmem:[#allocation2 + $0x58] sm:$0xf0]  ;;  %v371_v6 = vor.u32 %v468_v1, %v370_v0  ;;  %v346_v7 = vld [vmem:[#allocation2 + $0x20] sm:$0xf]  ;;  %v463_v8 = vld [vmem:[#allocation2 + $0x2c] sm:$0xf0] }
  0x17   :  { %272 = vmatpush.bf16.msra.mxu2 %v403_v46  ;;  %286 = vmatpush.bf16.msra.mxu3 %v407_v50  ;;  %v461_v9 = vld [vmem:[#allocation2 + $0x24] sm:$0xf]  ;;  %v375_v10 = vor.u32 %v466_v2, %v372_v3  ;;  %v348_v11 = vld [vmem:[#allocation2 + $0x30] sm:$0xf0]  ;;  %v354_v12 = vld [vmem:[#allocation2 + $0x28] sm:$0xf]  ;;  %v347_v16 = vor.u32 %v463_v8, %v346_v7 }
  0x18   :  { %v464_v13 = vld [vmem:[#allocation2 + $0x34] sm:$0xf0]  ;;  %v462_v14 = vld [vmem:[#allocation2 + $0x2c] sm:$0xf]  ;;  %v356_v15 = vld [vmem:[#allocation2 + $0x38] sm:$0xf0]  ;;  %v351_v17 = vor.u32 %v461_v9, %v348_v11 }
  0x19   :  { %245 = vmatpush.bf16.msra.mxu0 %v379_v56  ;;  %v355_v18 = vor.u32 %v464_v13, %v354_v12  ;;  %v330_v19 = vld [vmem:[#allocation2] sm:$0xf]  ;;  %v459_v20 = vld [vmem:[#allocation2 + $0xc] sm:$0xf0]  ;;  %v457_v21 = vld [vmem:[#allocation2 + $0x4] sm:$0xf]  ;;  %v359_v22 = vor.u32 %v462_v14, %v356_v15 }
  0x1a   :  { %259 = vmatpush.bf16.msra.mxu1 %v383_v57  ;;  %v332_v23 = vld [vmem:[#allocation2 + $0x10] sm:$0xf0]  ;;  %v338_v24 = vld [vmem:[#allocation2 + $0x8] sm:$0xf]  ;;  %v460_v25 = vld [vmem:[#allocation2 + $0x14] sm:$0xf0]  ;;  %v331_v28 = vor.u32 %v459_v20, %v330_v19 }
  0x1b   :  { %273 = vmatpush.bf16.msra.mxu2 %v387_v58  ;;  %287 = vmatpush.bf16.msra.mxu3 %v391_v62  ;;  %v458_v26 = vld [vmem:[#allocation2 + $0xc] sm:$0xf]  ;;  %v340_v27 = vld [vmem:[#allocation2 + $0x18] sm:$0xf0]  ;;  %v335_v29 = vor.u32 %v457_v21, %v332_v23  ;;  %v339_v30 = vor.u32 %v460_v25, %v338_v24  ;;  %v456_v32 = vld [vmem:[%s585_s0] sm:$0xff]  ;;  %s550_s0 = smov [#allocation5]  }
  0x1c   :  { %v343_v31 = vor.u32 %v458_v26, %v340_v27  ;;  %v65_v33 = vld [vmem:[%s587_s2] sm:$0xf]  ;;  %s309_s2 = sshll.u32 %s550_s0, 4  ;;  %s311_s24 = sshll.u32 %s588_s3, 4  ;;  %s310_s2 = int_to_ptr.vmem [resolvable:$true] %s309_s2  ;;  %s312_s24 = int_to_ptr.hbm [resolvable:$true] %s311_s24 }
  0x1d   :  { %246 = vmatpush.bf16.msra.mxu0 %v363_v4  ;;  %v67_v34 = vperm.slane %v65_v33, 0  ;;  %v68_v35 = vperm.slane %v65_v33, 1  ;;  %v69_v40 = vperm.slane %v65_v33, 2  ;;  %v70_v41 = vperm.slane %v65_v33, 3  ;;  %s551_s25 = smov 512   ;;  %s552_s26 = smov 32  }
  0x1e   :  { %260 = vmatpush.bf16.msra.mxu1 %v367_v5 }
  0x1f   :  { %274 = vmatpush.bf16.msra.mxu2 %v371_v6  ;;  %288 = vmatpush.bf16.msra.mxu3 %v375_v10 }
  0x21   :  { %247 = vmatpush.bf16.msra.mxu0 %v347_v16 }
  0x22   :  { %261 = vmatpush.bf16.msra.mxu1 %v351_v17 }
  0x23   :  { %275 = vmatpush.bf16.msra.mxu2 %v355_v18  ;;  %289 = vmatpush.bf16.msra.mxu3 %v359_v22 }
  0x25   :  { %248 = vmatpush.bf16.msra.mxu0 %v331_v28 }
  0x26   :  { %262 = vmatpush.bf16.msra.mxu1 %v335_v29 }
  0x27   :  { %276 = vmatpush.bf16.msra.mxu2 %v339_v30  ;;  %290 = vmatpush.bf16.msra.mxu3 %v343_v31 }
  0x28   :  { %249 = vmatmul.bf16.vlgmr.msra.gmra.mxu0 %v456_v32 }
  0x29   :  { %263 = vmatmul.bf16.vlgmr.msra.gmra.mxu1 %v456_v32 }
  0x2a   :  { %277 = vmatmul.bf16.vlgmr.msra.gmra.mxu2 %v456_v32  ;;  %291 = vmatmul.bf16.vlgmr.msra.gmra.mxu3 %v456_v32 }
  0xa5   :  { %v250_v36 = vpop.f32.mrf.mxu0 }
  0xa6   :  { %v251_v37 = vadd.f32 %v250_v36, %v67_v34  ;;  %v264_v38 = vpop.f32.mrf.mxu1 }
  0xa7   :  { %v265_v39 = vadd.f32 %v264_v38, %v68_v35 }
  0xa8   :  { %297 = vst [vmem:[#allocation5] sm:$0xff] %v251_v37 }
  0xa9   :  { %298 = vst [vmem:[#allocation5 + $0x8] sm:$0xff] %v265_v39 }
  0xad   :  { %v278_v42 = vpop.f32.mrf.mxu2  ;;  %v292_v44 = vpop.f32.mrf.mxu3 }
  0xae   :  { %v279_v43 = vadd.f32 %v278_v42, %v69_v40  ;;  %v252_v45 = vpop.f32.mrf.mxu0  ;;  %v293_v46 = vadd.f32 %v292_v44, %v70_v41  ;;  %v266_v48 = vpop.f32.mrf.mxu1 }
  0xaf   :  { %v253_v47 = vadd.f32 %v252_v45, %v67_v34  ;;  %v267_v49 = vadd.f32 %v266_v48, %v68_v35 }
  0xb0   :  { %299 = vst [vmem:[#allocation5 + $0x10] sm:$0xff] %v279_v43 }
  0xb1   :  { %300 = vst [vmem:[#allocation5 + $0x18] sm:$0xff] %v293_v46 }
  0xb2   :  { %301 = vst [vmem:[#allocation5 + $0x20] sm:$0xff] %v253_v47 }
  0xb3   :  { %302 = vst [vmem:[#allocation5 + $0x28] sm:$0xff] %v267_v49 }
  0xb5   :  { %v280_v50 = vpop.f32.mrf.mxu2  ;;  %v294_v52 = vpop.f32.mrf.mxu3 }
  0xb6   :  { %v281_v51 = vadd.f32 %v280_v50, %v69_v40  ;;  %v295_v53 = vadd.f32 %v294_v52, %v70_v41 }
  0xb8   :  { %303 = vst [vmem:[#allocation5 + $0x30] sm:$0xff] %v281_v51 }
  0xb9   :  { %304 = vst [vmem:[#allocation5 + $0x38] sm:$0xff] %v295_v53 }
  0xba   :  { %317 = dma.vmem_to_hbm [thread:$0]  %s310_s2, 1024, %s312_s24, [#allocation4], %s551_s25, %s551_s25, %s552_s26  }
  0xbb   :  { %545 = dma.done.wait [#allocation4], 1024  }
  0xbc   :  { %546 = vsyncadd [#allocation4], 4294966272 }
  0xbd   :  { %322 = vsyncpa [#allocation3], 1 }
  0xbe   :  { %323 = vsyncpa [#allocation4], 1 }

// kernel: bert_for_pretraining.19
= control target key start
LH: loop header
LB: loop body
LE: loop exit
PB: predicated region body
PF: predicated region fallthrough
CT: control target
= control target key end

     0   :  { %11 = vsyncpa [#allocation3], 0  ;;  %s681_s24 = smov [#allocation2]   ;;  %s682_s26 = smov 64   ;;  %s762_s0 = inlined_call_operand.vmem [shape: bf16[16,512], index: 0, kind: input, shape index: {}]   ;;  %s763_s1 = inlined_call_operand.hbm [shape: bf16[512,128], index: 1, kind: input, shape index: {}]   ;;  %s764_s2 = inlined_call_operand.vmem [shape: f32[1,128], index: 2, kind: input, shape index: {}]   ;;  %s765_s3 = inlined_call_operand.vmem [shape: bf16[16,128], index: 3, kind: input, shape index: {}]   ;;  %s766_s4 = inlined_call_operand.vmem [shape: f32[1,128], index: 4, kind: input, shape index: {}]   ;;  %s767_s5 = inlined_call_operand.vmem [shape: f32[1,128], index: 5, kind: input, shape index: {}]   ;;  %s768_s6 = inlined_call_operand.vmem [shape: bf16[16,128], index: 6, kind: output, shape index: {}]  }
   0x1   :  { %s18_s23 = sshll.u32 %s763_s1, 4  ;;  %s20_s25 = sshll.u32 %s681_s24, 4  ;;  %s19_s23 = int_to_ptr.hbm [resolvable:$true] %s18_s23  ;;  %s21_s25 = int_to_ptr.vmem [resolvable:$true] %s20_s25 }
   0x2   :  { %s683_s27 = smov 4  }
   0x3   :  { %26 = dma.hbm_to_vmem [thread:$0]  %s19_s23, 4096, %s21_s25, [#allocation3], %s682_s26, %s682_s26, %s683_s27  }
   0x4   :  { %679 = dma.done.wait [#allocation3], 4096  }
   0x5   :  { %680 = vsyncadd [#allocation3], 4294963200  ;;  %v608_v0 = vld [vmem:[#allocation2 + $0x38] sm:$0xff]  ;;  %v607_v4 = vld [vmem:[#allocation2 + $0x30] sm:$0xff] }
   0x6   :  { %v616_v1 = vld [vmem:[#allocation2 + $0x78] sm:$0xff]  ;;  %323 = vmatpush.bf16.msra.mxu0 %v608_v0  ;;  %v615_v5 = vld [vmem:[#allocation2 + $0x70] sm:$0xff]  ;;  %v606_v8 = vld [vmem:[#allocation2 + $0x28] sm:$0xff] }
   0x7   :  { %v624_v2 = vld [vmem:[#allocation2 + $0xb8] sm:$0xff]  ;;  %337 = vmatpush.bf16.msra.mxu1 %v616_v1  ;;  %v623_v6 = vld [vmem:[#allocation2 + $0xb0] sm:$0xff]  ;;  %v614_v9 = vld [vmem:[#allocation2 + $0x68] sm:$0xff] }
   0x8   :  { %v632_v3 = vld [vmem:[#allocation2 + $0xf8] sm:$0xff]  ;;  %351 = vmatpush.bf16.msra.mxu2 %v624_v2  ;;  %v631_v7 = vld [vmem:[#allocation2 + $0xf0] sm:$0xff]  ;;  %v622_v10 = vld [vmem:[#allocation2 + $0xa8] sm:$0xff]  ;;  %v684_v2 = vmov 128.0  }
   0x9   :  { %365 = vmatpush.bf16.msra.mxu3 %v632_v3  ;;  %v630_v11 = vld [vmem:[#allocation2 + $0xe8] sm:$0xff]  ;;  %v605_v12 = vld [vmem:[#allocation2 + $0x20] sm:$0xff]  ;;  %v604_v16 = vld [vmem:[#allocation2 + $0x18] sm:$0xff]  ;;  %649 = vrcp.f32 %v684_v2 }
   0xa   :  { %324 = vmatpush.bf16.msra.mxu0 %v607_v4  ;;  %v613_v13 = vld [vmem:[#allocation2 + $0x60] sm:$0xff]  ;;  %v612_v17 = vld [vmem:[#allocation2 + $0x58] sm:$0xff]  ;;  %v603_v20 = vld [vmem:[#allocation2 + $0x10] sm:$0xff] }
   0xb   :  { %338 = vmatpush.bf16.msra.mxu1 %v615_v5  ;;  %v621_v14 = vld [vmem:[#allocation2 + $0xa0] sm:$0xff]  ;;  %v620_v18 = vld [vmem:[#allocation2 + $0x98] sm:$0xff]  ;;  %v611_v21 = vld [vmem:[#allocation2 + $0x50] sm:$0xff] }
   0xc   :  { %352 = vmatpush.bf16.msra.mxu2 %v623_v6  ;;  %v629_v15 = vld [vmem:[#allocation2 + $0xe0] sm:$0xff]  ;;  %v628_v19 = vld [vmem:[#allocation2 + $0xd8] sm:$0xff]  ;;  %v619_v22 = vld [vmem:[#allocation2 + $0x90] sm:$0xff] }
   0xd   :  { %366 = vmatpush.bf16.msra.mxu3 %v631_v7  ;;  %v627_v23 = vld [vmem:[#allocation2 + $0xd0] sm:$0xff]  ;;  %v602_v24 = vld [vmem:[#allocation2 + $0x8] sm:$0xff]  ;;  %v601_v28 = vld [vmem:[#allocation2] sm:$0xff] }
   0xe   :  { %325 = vmatpush.bf16.msra.mxu0 %v606_v8  ;;  %v610_v25 = vld [vmem:[#allocation2 + $0x48] sm:$0xff]  ;;  %v609_v29 = vld [vmem:[#allocation2 + $0x40] sm:$0xff]  ;;  %v599_v33 = vld [vmem:[%s762_s0 + $0xc] sm:$0xf0] }
   0xf   :  { %339 = vmatpush.bf16.msra.mxu1 %v614_v9  ;;  %v618_v26 = vld [vmem:[#allocation2 + $0x88] sm:$0xff]  ;;  %v617_v30 = vld [vmem:[#allocation2 + $0x80] sm:$0xff]  ;;  %v457_v35 = vld [vmem:[%s762_s0 + $0x10] sm:$0xf0]  ;;  %v650_v3 = vpop.eup %649 }
  0x10   :  { %353 = vmatpush.bf16.msra.mxu2 %v622_v10  ;;  %v626_v27 = vld [vmem:[#allocation2 + $0xc8] sm:$0xff]  ;;  %v625_v31 = vld [vmem:[#allocation2 + $0xc0] sm:$0xff]  ;;  %v600_v37 = vld [vmem:[%s762_s0 + $0x14] sm:$0xf0]  ;;  %v390_v4 = vmul.f32 128.0, %v650_v3  ;;  %vm394_vm0 = vweird.f32 %v650_v3 }
  0x11   :  { %367 = vmatpush.bf16.msra.mxu3 %v630_v11  ;;  %v455_v32 = vld [vmem:[%s762_s0] sm:$0xf]  ;;  %v597_v34 = vld [vmem:[%s762_s0 + $0x4] sm:$0xf]  ;;  %v463_v36 = vld [vmem:[%s762_s0 + $0x8] sm:$0xf] }
  0x12   :  { %326 = vmatpush.bf16.msra.mxu0 %v605_v12  ;;  %v598_v38 = vld [vmem:[%s762_s0 + $0xc] sm:$0xf]  ;;  %v465_v39 = vld [vmem:[%s762_s0 + $0x18] sm:$0xf0]  ;;  %v456_v40 = vor.u32 %v599_v33, %v455_v32  ;;  %v460_v41 = vor.u32 %v597_v34, %v457_v35  ;;  %v464_v42 = vor.u32 %v600_v37, %v463_v36  ;;  %v646_v44 = vld [vmem:[%s764_s2] ss:$0 sm:$0xff] }
  0x13   :  { %340 = vmatpush.bf16.msra.mxu1 %v613_v13  ;;  %v468_v43 = vor.u32 %v598_v38, %v465_v39  ;;  %v634_v49 = vld [vmem:[%s765_s3] sm:$0xff]   ;;  %v391_v5 = vsub.f32 1.0, %v390_v4 }
  0x14   :  { %354 = vmatpush.bf16.msra.mxu2 %v621_v14  ;;  %v635_v54 = vunpack.c.l.bf16 %v634_v49  ;;  %v636_v62 = vunpack.c.h.bf16 %v634_v49  ;;  %v647_v35 = vld [vmem:[%s766_s4] ss:$0 sm:$0xff] }
  0x15   :  { %368 = vmatpush.bf16.msra.mxu3 %v629_v15  ;;  %v392_v6 = vmul.f32 %v650_v3, %v391_v5  ;;  %v648_v39 = vld [vmem:[%s767_s5] ss:$0 sm:$0xff] }
  0x16   :  { %327 = vmatpush.bf16.msra.mxu0 %v604_v16 }
  0x17   :  { %341 = vmatpush.bf16.msra.mxu1 %v612_v17  ;;  %v393_v7 = vadd.f32 %v650_v3, %v392_v6 }
  0x18   :  { %355 = vmatpush.bf16.msra.mxu2 %v620_v18 }
  0x19   :  { %369 = vmatpush.bf16.msra.mxu3 %v628_v19  ;;  %v395_v8 = vsel %vm394_vm0, %v650_v3, %v393_v7 }
  0x1a   :  { %328 = vmatpush.bf16.msra.mxu0 %v603_v20 }
  0x1b   :  { %342 = vmatpush.bf16.msra.mxu1 %v611_v21 }
  0x1c   :  { %356 = vmatpush.bf16.msra.mxu2 %v619_v22 }
  0x1d   :  { %370 = vmatpush.bf16.msra.mxu3 %v627_v23 }
  0x1e   :  { %329 = vmatpush.bf16.msra.mxu0 %v602_v24 }
  0x1f   :  { %343 = vmatpush.bf16.msra.mxu1 %v610_v25 }
  0x20   :  { %357 = vmatpush.bf16.msra.mxu2 %v618_v26 }
  0x21   :  { %371 = vmatpush.bf16.msra.mxu3 %v626_v27 }
  0x22   :  { %330 = vmatpush.bf16.msra.mxu0 %v601_v28 }
  0x23   :  { %344 = vmatpush.bf16.msra.mxu1 %v609_v29 }
  0x24   :  { %358 = vmatpush.bf16.msra.mxu2 %v617_v30 }
  0x25   :  { %372 = vmatpush.bf16.msra.mxu3 %v625_v31  ;;  %331 = vmatmul.bf16.vlgmr.msra.gmra.mxu0 %v456_v40 }
  0x26   :  { %345 = vmatmul.bf16.vlgmr.msra.gmra.mxu1 %v460_v41 }
  0x27   :  { %359 = vmatmul.bf16.vlgmr.msra.gmra.mxu2 %v464_v42 }
  0x28   :  { %373 = vmatmul.bf16.vlgmr.msra.gmra.mxu3 %v468_v43 }
  0xa2   :  { %v332_v45 = vpop.f32.mrf.mxu0 }
  0xa3   :  { %v333_v46 = vadd.f32 %v646_v44, %v332_v45  ;;  %v346_v47 = vpop.f32.mrf.mxu1 }
  0xa5   :  { %v347_v48 = vadd.f32 %v346_v47, %v333_v46 }
  0xaa   :  { %v360_v50 = vpop.f32.mrf.mxu2  ;;  %v334_v53 = vpop.f32.mrf.mxu0 }
  0xab   :  { %v374_v51 = vpop.f32.mrf.mxu3  ;;  %v361_v52 = vadd.f32 %v360_v50, %v347_v48  ;;  %v335_v56 = vadd.f32 %v646_v44, %v334_v53  ;;  %v348_v58 = vpop.f32.mrf.mxu1 }
  0xad   :  { %v375_v55 = vadd.f32 %v374_v51, %v361_v52  ;;  %v349_v59 = vadd.f32 %v348_v58, %v335_v56 }
  0xaf   :  { %v383_v57 = vadd.f32 %v635_v54, %v375_v55 }
  0xb1   :  { %385 = vadd.xlane.f32.xlu0 %v383_v57 }
  0xb2   :  { %v362_v60 = vpop.f32.mrf.mxu2 }
  0xb3   :  { %v363_v61 = vadd.f32 %v362_v60, %v349_v59  ;;  %v376_v63 = vpop.f32.mrf.mxu3 }
  0xb5   :  { %v377_v0 = vadd.f32 %v376_v63, %v363_v61 }
  0xb7   :  { %v384_v1 = vadd.f32 %v636_v62, %v377_v0 }
  0xb9   :  { %387 = vadd.xlane.f32.xlu0 %v384_v1 }
 0x124   :  { %v386_v9 = vpop.xlane.xlu0 %385 }
 0x125   :  { %v396_v10 = vmul.f32 %v395_v8, %v386_v9 }
 0x127   :  { %v398_v11 = vsub.f32 %v383_v57, %v396_v10 }
 0x129   :  { %v400_v12 = vmul.f32 %v398_v11, %v398_v11 }
 0x12b   :  { %402 = vadd.xlane.f32.xlu1 %v400_v12 }
 0x12c   :  { %v388_v13 = vpop.xlane.xlu0 %387 }
 0x12d   :  { %v397_v14 = vmul.f32 %v395_v8, %v388_v13 }
 0x12f   :  { %v399_v15 = vsub.f32 %v384_v1, %v397_v14 }
 0x131   :  { %v401_v16 = vmul.f32 %v399_v15, %v399_v15 }
 0x133   :  { %404 = vadd.xlane.f32.xlu1 %v401_v16 }
 0x19e   :  { %v403_v17 = vpop.xlane.xlu1 %402 }
 0x19f   :  { %v406_v18 = vmul.f32 %v403_v17, %v395_v8 }
 0x1a1   :  { %v408_v19 = vadd.f32 1e-05, %v406_v18 }
 0x1a3   :  { %651 = vrsqrt.f32 %v408_v19  ;;  %vm416_vm2 = vweird.f32 %v408_v19 }
 0x1a6   :  { %v405_v20 = vpop.xlane.xlu1 %404 }
 0x1a7   :  { %v407_v21 = vmul.f32 %v405_v20, %v395_v8 }
 0x1a9   :  { %v652_v22 = vpop.eup %651  ;;  %v409_v23 = vadd.f32 1e-05, %v407_v21 }
 0x1aa   :  { %v411_v24 = vmul.f32 %v652_v22, %v408_v19  ;;  %vm417_vm1 = vweird.f32 %v652_v22 }
 0x1ab   :  { %653 = vrsqrt.f32 %v409_v23  ;;  %vm418_vm3 = vmor %vm416_vm2, %vm417_vm1  ;;  %vm426_vm5 = vweird.f32 %v409_v23 }
 0x1ac   :  { %v412_v25 = vmul.f32 %v652_v22, %v411_v24 }
 0x1ae   :  { %v413_v26 = vmul.f32 0.5, %v412_v25 }
 0x1b0   :  { %v414_v27 = vsub.f32 1.5, %v413_v26 }
 0x1b1   :  { %v654_v28 = vpop.eup %653 }
 0x1b2   :  { %v415_v29 = vmul.f32 %v652_v22, %v414_v27  ;;  %v421_v30 = vmul.f32 %v654_v28, %v409_v23  ;;  %vm427_vm4 = vweird.f32 %v654_v28 }
 0x1b3   :  { %vm428_vm6 = vmor %vm426_vm5, %vm427_vm4 }
 0x1b4   :  { %v422_v31 = vmul.f32 %v654_v28, %v421_v30  ;;  %v419_v32 = vsel %vm418_vm3, %v652_v22, %v415_v29 }
 0x1b5   :  { %v430_v36 = vmul.f32 %v419_v32, %v398_v11 }
 0x1b6   :  { %v423_v33 = vmul.f32 0.5, %v422_v31 }
 0x1b7   :  { %v436_v40 = vmul.f32 %v647_v35, %v430_v36 }
 0x1b8   :  { %v424_v34 = vsub.f32 1.5, %v423_v33 }
 0x1b9   :  { %v442_v43 = vadd.f32 %v648_v39, %v436_v40 }
 0x1ba   :  { %v425_v37 = vmul.f32 %v654_v28, %v424_v34 }
 0x1bc   :  { %v429_v38 = vsel %vm428_vm6, %v654_v28, %v425_v37 }
 0x1bd   :  { %v431_v41 = vmul.f32 %v429_v38, %v399_v15 }
 0x1bf   :  { %v437_v42 = vmul.f32 %v647_v35, %v431_v41 }
 0x1c1   :  { %v443_v44 = vadd.f32 %v648_v39, %v437_v42 }
 0x1c3   :  { %v640_v45 = vpack.c.bf16 %v443_v44, %v442_v43 }
 0x1c5   :  { %641 = vst [vmem:[%s768_s6] sm:$0xff] %v640_v45  }
 0x1c6   :  { %452 = vsyncpa [#allocation3], 1 }

// kernel: bert_for_pretraining.27
= control target key start
LH: loop header
LB: loop body
LE: loop exit
PB: predicated region body
PF: predicated region fallthrough
CT: control target
= control target key end

     0   :  { %s237_s0 = inlined_call_operand.vmem [shape: bf16[2,128], index: 0, kind: input, shape index: {}]   ;;  %s238_s1 = inlined_call_operand.vmem [shape: bf16[128,2], index: 1, kind: input, shape index: {}]   ;;  %s239_s2 = inlined_call_operand.vmem [shape: f32[1,2], index: 2, kind: input, shape index: {}]   ;;  %s240_s3 = inlined_call_operand.hbm [shape: f32[2,2], index: 3, kind: output, shape index: {}]  }
   0x1   :  { %v154_v0 = vld [vmem:[%s238_s1 + $0x38] sm:$0xff]  ;;  %v153_v1 = vld [vmem:[%s238_s1 + $0x30] sm:$0xff] }
   0x2   :  { %84 = vmatpush.bf16.msra.mxu0 %v154_v0 }
   0x3   :  { %8 = vsyncpa [#allocation3], 0  ;;  %v152_v2 = vld [vmem:[%s238_s1 + $0x28] sm:$0xff]  ;;  %v151_v3 = vld [vmem:[%s238_s1 + $0x20] sm:$0xff]  ;;  %s183_s5 = smov [#allocation2]   ;;  %s106_s9 = sshll.u32 %s240_s3, 4  ;;  %s107_s9 = int_to_ptr.hbm [resolvable:$true] %s106_s9 }
   0x4   :  { %v150_v4 = vld [vmem:[%s238_s1 + $0x18] sm:$0xff]  ;;  %v149_v5 = vld [vmem:[%s238_s1 + $0x10] sm:$0xff]  ;;  %v148_v6 = vld [vmem:[%s238_s1 + $0x8] sm:$0xff]  ;;  %s104_s6 = sshll.u32 %s183_s5, 4  ;;  %vm97_vm0 = vcmask 9216   ;;  %s105_s6 = int_to_ptr.vmem [resolvable:$true] %s104_s6 }
   0x5   :  { %v147_v7 = vld [vmem:[%s238_s1] sm:$0xff] }
   0x6   :  { %85 = vmatpush.bf16.msra.mxu0 %v153_v1  ;;  %v15_v8 = vld [vmem:[%s237_s0] sm:$0x1] }
   0x7   :  { %v156_v9 = vld [vmem:[%s239_s2] ss:$0 sm:$0xff] }
   0xa   :  { %86 = vmatpush.bf16.msra.mxu0 %v152_v2 }
   0xe   :  { %87 = vmatpush.bf16.msra.mxu0 %v151_v3 }
  0x12   :  { %88 = vmatpush.bf16.msra.mxu0 %v150_v4 }
  0x16   :  { %89 = vmatpush.bf16.msra.mxu0 %v149_v5 }
  0x1a   :  { %90 = vmatpush.bf16.msra.mxu0 %v148_v6 }
  0x1e   :  { %91 = vmatpush.bf16.msra.mxu0 %v147_v7 }
  0x21   :  { %92 = vmatmul.bf16.vlgmr.msra.gmra.mxu0 %v15_v8 }
  0x9e   :  { %v93_v10 = vpop.f32.mrf.mxu0 }
  0x9f   :  { %v94_v11 = vadd.f32 %v156_v9, %v93_v10 }
  0xa1   :  { %98 = vst.msk [vmem:[#allocation2] sm:$0x3] %vm97_vm0, %v94_v11 }
  0xa2   :  { %109 = dma.vmem_to_hbm [thread:$0]  %s105_s6, 32, %s107_s9, [#allocation3]  }
  0xa6   :  { %v95_v12 = vpop.f32.mrf.mxu0 }
  0xa7   :  { %181 = dma.done.wait [#allocation3], 32  }
  0xa8   :  { %182 = vsyncadd [#allocation3], 4294967264 }
  0xa9   :  { %114 = vsyncpa [#allocation3], 1 }

</bundles_post_ra>
